<compile_context>
chip_gen: v7x
topology: tpu7x:2x2x1
jax: 0.10.0
libtpu: 0.0.40
codegen_flags: <defaults>
</compile_context>

<pallas_src>
import functools

import jax
import jax.numpy as jnp
from jax.experimental import pallas as pl
from jax.experimental.pallas import tpu as pltpu


def _round_up(x, m):
    return ((x + m - 1) // m) * m


def cnn_forward_kernel(tok_ref, emb_ref, wconv_ref, bconv_ref, wfc_ref, bfc_ref,
                       out_ref, *, t_seq, t_out, k_size, pad, v_pad):
    # tok_ref:   (TB, T)       int32 token ids for this batch block
    # emb_ref:   (V_pad, E)    bf16 embedding table (VMEM-resident, constant block)
    # wconv_ref: (K*E, F)      bf16, conv taps folded into the contraction dim
    # bconv_ref: (1, F)        f32 conv bias
    # wfc_ref:   (L, F)        f32 fc weight (PyTorch layout)
    # bfc_ref:   (L, 1)        f32 fc bias (column)
    # out_ref:   (L, TB)       f32 sigmoid(logits), batch on the lane axis
    tb = tok_ref.shape[0]
    e = emb_ref.shape[1]

    tok = tok_ref[...]                                           # (TB, T) int32
    table = emb_ref[...]                                         # (V_pad, E) bf16

    # ---- in-kernel embedding gather (one-hot MXU matmul) -------------------
    # Per time step: take one token column, broadcast it across the vocab lane
    # axis, compare against a lane iota -> one-hot row block.  All T one-hot
    # blocks are stacked along sublanes so a single matmul (one MXU weight
    # push) performs the whole lookup.
    vocab_iota = jax.lax.broadcasted_iota(jnp.int32, (tb, v_pad), 1)
    oh_blocks = [
        (tok[:, t:t + 1] == vocab_iota).astype(jnp.bfloat16)     # (TB, V_pad)
        for t in range(t_seq)
    ]
    oh_all = jnp.concatenate(oh_blocks, axis=0)                  # (T*TB, V_pad)
    xg_all = jnp.dot(oh_all, table,
                     preferred_element_type=jnp.float32).astype(jnp.bfloat16)
    # xg_all row (t*TB + b) = embedding of tokens[b, t]          # (T*TB, E)

    zero_blk = jnp.zeros((tb, e), jnp.bfloat16)

    def emb_at(t):
        # Conv zero padding handled at trace time: out-of-range time steps are
        # exact zero blocks (same as PyTorch's Conv1d padding).
        if t < 0 or t >= t_seq:
            return zero_blk
        return xg_all[t * tb:(t + 1) * tb, :]                    # (TB, E)

    # ---- im2col conv: single K*E-deep contraction over valid rows only -----
    rows = []
    for t in range(t_out):                                       # valid outputs only
        rows.append(jnp.concatenate(
            [emb_at(t + k - pad) for k in range(k_size)], axis=1))   # (TB, K*E)
    lhs = jnp.concatenate(rows, axis=0)                          # (t_out*TB, K*E)

    acc = jnp.dot(lhs, wconv_ref[...],
                  preferred_element_type=jnp.float32)            # (t_out*TB, F)
    n_filt = acc.shape[1]

    # Max over time (rows are (t, b)-ordered; reduce over the outer axis).
    pooled = jnp.max(acc.reshape(t_out, tb, n_filt), axis=0)     # (TB, F)

    # tanh is monotone and the conv bias is time-constant:
    #   max_t tanh(acc + b) == tanh(max_t acc + b)
    act = jnp.tanh(pooled + bconv_ref[...])                      # (TB, F) f32

    # Transposed FC so the output block is lane-dense: (L, F) x (TB, F)^T.
    logits_t = jax.lax.dot_general(
        wfc_ref[...], act, (((1,), (1,)), ((), ())),
        preferred_element_type=jnp.float32)                      # (L, TB)
    out_ref[...] = jax.nn.sigmoid(logits_t + bfc_ref[...])


@functools.partial(jax.jit, static_argnames=("filter_size", "batch_block"))
def cnn_forward(tokens, embed_table, conv_w, conv_b, fc_w, fc_b, *,
                filter_size=4, batch_block=128):
    """tokens: (B, T) int32.  Params in PyTorch layouts:
       embed_table (V+2, E), conv_w (F, E, K), conv_b (F,), fc_w (L, F), fc_b (L,).

    batch_block (TB): rows per grid step.  At T=16, E=32, F=32 the per-step
    working set is ~(T*V_pad*2 + 2*t_out*K*E*2 + t_out*128*4 + T*128*4) bytes
    per row (~40 KB/row), so TB=128 targets ~2-3 MiB per step - comfortably
    inside the scoped VMEM limit on v5e/v6e/v7x while amortizing the ~0.35 us
    per-step overhead and keeping the output store lane-dense."""
    B, T = tokens.shape
    V_rows, E = embed_table.shape
    F_ = conv_w.shape[0]
    L = fc_w.shape[0]
    K = filter_size
    pad = round(filter_size / 2)
    t_out = T + 2 * pad - K + 1                    # PyTorch Conv1d output length

    # Batch block: a multiple of 128 when the grid has >1 step (lane-dense
    # (L, TB) output stores); otherwise a single block covering the padded
    # batch.  B > batch_block automatically gives >=2 blocks for v7x's 2 TCs.
    tb_cap = max(128, _round_up(batch_block, 128))
    if B <= tb_cap:
        TB = _round_up(B, 16)
        n_blocks = 1
    else:
        TB = tb_cap
        n_blocks = pl.cdiv(B, TB)
    B_pad = n_blocks * TB

    V_pad = _round_up(V_rows, 128)                 # one lane tile of vocab ids

    tok_pad = jnp.pad(tokens.astype(jnp.int32), ((0, B_pad - B), (0, 0)))
    emb = jnp.pad(embed_table.astype(jnp.bfloat16),
                  ((0, V_pad - V_rows), (0, 0)))                       # (V_pad, E)
    # Conv weight (F, E, K) -> (K*E, F): W[k*E + e, f] = w[f, e, k].
    wconv = jnp.transpose(conv_w, (2, 1, 0)).reshape(K * E, F_).astype(jnp.bfloat16)
    bconv = conv_b.reshape(1, F_).astype(jnp.float32)
    wfc = fc_w.astype(jnp.float32)                                     # (L, F)
    bfc = fc_b.reshape(L, 1).astype(jnp.float32)                       # (L, 1)

    kernel = functools.partial(cnn_forward_kernel, t_seq=T, t_out=t_out,
                               k_size=K, pad=pad, v_pad=V_pad)

    out_t = pl.pallas_call(
        kernel,
        out_shape=jax.ShapeDtypeStruct((L, B_pad), jnp.float32),
        grid_spec=pltpu.PrefetchScalarGridSpec(
            num_scalar_prefetch=0,
            grid=(n_blocks,),
            in_specs=[
                pl.BlockSpec((TB, T), lambda b: (b, 0)),       # tokens
                pl.BlockSpec((V_pad, E), lambda b: (0, 0)),    # embedding table
                pl.BlockSpec((K * E, F_), lambda b: (0, 0)),   # folded conv weight
                pl.BlockSpec((1, F_), lambda b: (0, 0)),       # conv bias
                pl.BlockSpec((L, F_), lambda b: (0, 0)),       # fc weight
                pl.BlockSpec((L, 1), lambda b: (0, 0)),        # fc bias
            ],
            out_specs=pl.BlockSpec((L, TB), lambda b: (0, b)),
        ),
        compiler_params=pltpu.CompilerParams(
            dimension_semantics=("parallel",),     # batch blocks shard across TCs
            vmem_limit_bytes=32 * 1024 * 1024,
        ),
    )(tok_pad, emb, wconv, bconv, wfc, bfc)

    yhat = jnp.transpose(out_t)[:B]                # (B, L); drop batch padding
    loss = None                                    # task == 'cnn'
    return yhat, loss


def _reference_forward(tokens, embed_table, conv_w, conv_b, fc_w, fc_b, filter_size=4):
    """Pure-JAX reference mirroring the PyTorch graph.  Uses the same bf16
    storage of embeddings / conv weights as the kernel (f32 accumulation), so
    the comparison tolerance only absorbs accumulation-order differences."""
    pad = round(filter_size / 2)
    x = jnp.take(embed_table.astype(jnp.bfloat16), tokens, axis=0).astype(jnp.float32)
    x = jnp.transpose(x, (0, 2, 1))                              # (B, E, T)
    w = conv_w.astype(jnp.bfloat16).astype(jnp.float32)
    y = jax.lax.conv_general_dilated(
        x, w, window_strides=(1,), padding=[(pad, pad)],
        dimension_numbers=("NCH", "OIH", "NCH"),
        preferred_element_type=jnp.float32)                      # (B, F, t_out)
    y = y + conv_b[None, :, None]
    y = jnp.tanh(y)
    pooled = jnp.max(y, axis=2)                                  # (B, F)
    logits = pooled @ fc_w.T + fc_b
    return jax.nn.sigmoid(logits)


if __name__ == "__main__":
    # Small, module-consistent shapes.
    B, T = 10, 16         # batch, sequence length
    V = 50                # vocab_size
    E = 32                # embed_size
    F_ = 32               # num_filter_maps
    K = 4                 # filter_size
    L = 8                 # len(LABEL_TYPES)

    key = jax.random.PRNGKey(0)
    k_emb, k_cw, k_cb, k_fw, k_fb, k_tok, k_tok2 = jax.random.split(key, 7)

    # Deterministic parameter init (shapes follow CNN.__init__).
    embed_table = jax.random.normal(k_emb, (V + 2, E), jnp.float32)
    embed_table = embed_table.at[0].set(0.0)                     # padding_idx=0
    lim_conv = (6.0 / (E * K + F_ * K)) ** 0.5                   # xavier_uniform_
    conv_w = jax.random.uniform(k_cw, (F_, E, K), jnp.float32, -lim_conv, lim_conv)
    conv_b = jax.random.uniform(k_cb, (F_,), jnp.float32, -0.05, 0.05)
    lim_fc = (6.0 / (F_ + L)) ** 0.5                             # xavier_uniform_
    fc_w = jax.random.uniform(k_fw, (L, F_), jnp.float32, -lim_fc, lim_fc)
    fc_b = jax.random.uniform(k_fb, (L,), jnp.float32, -0.05, 0.05)

    tokens = jax.random.randint(k_tok, (B, T), 0, V + 2, dtype=jnp.int32)

    # Single-block path (TB = padded B, grid = 1).
    yhat, loss = cnn_forward(tokens, embed_table, conv_w, conv_b, fc_w, fc_b,
                             filter_size=K, batch_block=128)
    yhat = jax.block_until_ready(yhat)
    assert yhat.shape == (B, L) and loss is None
    assert bool(jnp.all(jnp.isfinite(yhat)))
    ref = jax.block_until_ready(
        _reference_forward(tokens, embed_table, conv_w, conv_b, fc_w, fc_b, K))
    max_err = float(jnp.max(jnp.abs(yhat - ref)))
    assert jnp.allclose(yhat, ref, atol=1e-2, rtol=0.0), (
        f"mismatch vs reference: max abs err {max_err}")

    # Multi-block path (grid = 2, TB = 128, lane-dense 128-wide output stores).
    B2 = 160
    tokens2 = jax.random.randint(k_tok2, (B2, T), 0, V + 2, dtype=jnp.int32)
    yhat2, _ = cnn_forward(tokens2, embed_table, conv_w, conv_b, fc_w, fc_b,
                           filter_size=K, batch_block=128)
    yhat2 = jax.block_until_ready(yhat2)
    assert yhat2.shape == (B2, L)
    ref2 = jax.block_until_ready(
        _reference_forward(tokens2, embed_table, conv_w, conv_b, fc_w, fc_b, K))
    max_err2 = float(jnp.max(jnp.abs(yhat2 - ref2)))
    assert jnp.allclose(yhat2, ref2, atol=1e-2, rtol=0.0), (
        f"mismatch vs reference (multi-block): max abs err {max_err2}")

    print("KERNEL_OK")
</pallas_src>

<mosaic_0001>
module attributes {stable_mosaic.version = 11 : i64} {
  func.func @cnn_forward_kernel(%arg0: i32, %arg1: memref<16x16xi32, #tpu.memory_space<vmem>>, %arg2: memref<128x32xbf16, #tpu.memory_space<vmem>>, %arg3: memref<128x32xbf16, #tpu.memory_space<vmem>>, %arg4: memref<1x32xf32, #tpu.memory_space<vmem>>, %arg5: memref<8x32xf32, #tpu.memory_space<vmem>>, %arg6: memref<8x1xf32, #tpu.memory_space<vmem>>, %arg7: memref<8x16xf32, #tpu.memory_space<vmem>>) attributes {dimension_semantics = [#tpu.dimension_semantics<parallel>], iteration_bounds = array<i64: 1>, scalar_prefetch = 0 : i64, scratch_operands = 0 : i64, tpu.core_type = #tpu.core_type<tc>, window_params = [{transform_indices = @transform_0, window_bounds = array<i64: 16, 16>}, {pipeline_mode = #tpu.pipeline_mode<synchronous>, transform_indices = @transform_1, window_bounds = array<i64: 128, 32>}, {pipeline_mode = #tpu.pipeline_mode<synchronous>, transform_indices = @transform_2, window_bounds = array<i64: 128, 32>}, {pipeline_mode = #tpu.pipeline_mode<synchronous>, transform_indices = @transform_3, window_bounds = array<i64: 1, 32>}, {pipeline_mode = #tpu.pipeline_mode<synchronous>, transform_indices = @transform_4, window_bounds = array<i64: 8, 32>}, {pipeline_mode = #tpu.pipeline_mode<synchronous>, transform_indices = @transform_5, window_bounds = array<i64: 8, 1>}, {transform_indices = @transform_6, window_bounds = array<i64: 8, 16>}]} {
    %c0 = arith.constant 0 : index
    %c0_0 = arith.constant 0 : index
    %0 = vector.load %arg1[%c0, %c0_0] : memref<16x16xi32, #tpu.memory_space<vmem>>, vector<16x16xi32>
    %c0_1 = arith.constant 0 : index
    %c0_2 = arith.constant 0 : index
    %1 = vector.load %arg2[%c0_1, %c0_2] : memref<128x32xbf16, #tpu.memory_space<vmem>>, vector<128x32xbf16>
    %2 = tpu.iota {dimensions = array<i32: 1>} : vector<16x128xi32>
    %3 = vector.extract_strided_slice %0 {offsets = [0, 0], sizes = [16, 1], strides = [1, 1]} : vector<16x16xi32> to vector<16x1xi32>
    %4 = vector.broadcast %3 : vector<16x1xi32> to vector<16x128xi32>
    %5 = arith.cmpi eq, %4, %2 : vector<16x128xi32>
    %6 = arith.extui %5 : vector<16x128xi1> to vector<16x128xi32>
    %7 = arith.sitofp %6 : vector<16x128xi32> to vector<16x128xf32>
    %8 = arith.truncf %7 : vector<16x128xf32> to vector<16x128xbf16>
    %9 = vector.extract_strided_slice %0 {offsets = [0, 1], sizes = [16, 1], strides = [1, 1]} : vector<16x16xi32> to vector<16x1xi32>
    %10 = vector.broadcast %9 : vector<16x1xi32> to vector<16x128xi32>
    %11 = arith.cmpi eq, %10, %2 : vector<16x128xi32>
    %12 = arith.extui %11 : vector<16x128xi1> to vector<16x128xi32>
    %13 = arith.sitofp %12 : vector<16x128xi32> to vector<16x128xf32>
    %14 = arith.truncf %13 : vector<16x128xf32> to vector<16x128xbf16>
    %15 = vector.extract_strided_slice %0 {offsets = [0, 2], sizes = [16, 1], strides = [1, 1]} : vector<16x16xi32> to vector<16x1xi32>
    %16 = vector.broadcast %15 : vector<16x1xi32> to vector<16x128xi32>
    %17 = arith.cmpi eq, %16, %2 : vector<16x128xi32>
    %18 = arith.extui %17 : vector<16x128xi1> to vector<16x128xi32>
    %19 = arith.sitofp %18 : vector<16x128xi32> to vector<16x128xf32>
    %20 = arith.truncf %19 : vector<16x128xf32> to vector<16x128xbf16>
    %21 = vector.extract_strided_slice %0 {offsets = [0, 3], sizes = [16, 1], strides = [1, 1]} : vector<16x16xi32> to vector<16x1xi32>
    %22 = vector.broadcast %21 : vector<16x1xi32> to vector<16x128xi32>
    %23 = arith.cmpi eq, %22, %2 : vector<16x128xi32>
    %24 = arith.extui %23 : vector<16x128xi1> to vector<16x128xi32>
    %25 = arith.sitofp %24 : vector<16x128xi32> to vector<16x128xf32>
    %26 = arith.truncf %25 : vector<16x128xf32> to vector<16x128xbf16>
    %27 = vector.extract_strided_slice %0 {offsets = [0, 4], sizes = [16, 1], strides = [1, 1]} : vector<16x16xi32> to vector<16x1xi32>
    %28 = vector.broadcast %27 : vector<16x1xi32> to vector<16x128xi32>
    %29 = arith.cmpi eq, %28, %2 : vector<16x128xi32>
    %30 = arith.extui %29 : vector<16x128xi1> to vector<16x128xi32>
    %31 = arith.sitofp %30 : vector<16x128xi32> to vector<16x128xf32>
    %32 = arith.truncf %31 : vector<16x128xf32> to vector<16x128xbf16>
    %33 = vector.extract_strided_slice %0 {offsets = [0, 5], sizes = [16, 1], strides = [1, 1]} : vector<16x16xi32> to vector<16x1xi32>
    %34 = vector.broadcast %33 : vector<16x1xi32> to vector<16x128xi32>
    %35 = arith.cmpi eq, %34, %2 : vector<16x128xi32>
    %36 = arith.extui %35 : vector<16x128xi1> to vector<16x128xi32>
    %37 = arith.sitofp %36 : vector<16x128xi32> to vector<16x128xf32>
    %38 = arith.truncf %37 : vector<16x128xf32> to vector<16x128xbf16>
    %39 = vector.extract_strided_slice %0 {offsets = [0, 6], sizes = [16, 1], strides = [1, 1]} : vector<16x16xi32> to vector<16x1xi32>
    %40 = vector.broadcast %39 : vector<16x1xi32> to vector<16x128xi32>
    %41 = arith.cmpi eq, %40, %2 : vector<16x128xi32>
    %42 = arith.extui %41 : vector<16x128xi1> to vector<16x128xi32>
    %43 = arith.sitofp %42 : vector<16x128xi32> to vector<16x128xf32>
    %44 = arith.truncf %43 : vector<16x128xf32> to vector<16x128xbf16>
    %45 = vector.extract_strided_slice %0 {offsets = [0, 7], sizes = [16, 1], strides = [1, 1]} : vector<16x16xi32> to vector<16x1xi32>
    %46 = vector.broadcast %45 : vector<16x1xi32> to vector<16x128xi32>
    %47 = arith.cmpi eq, %46, %2 : vector<16x128xi32>
    %48 = arith.extui %47 : vector<16x128xi1> to vector<16x128xi32>
    %49 = arith.sitofp %48 : vector<16x128xi32> to vector<16x128xf32>
    %50 = arith.truncf %49 : vector<16x128xf32> to vector<16x128xbf16>
    %51 = vector.extract_strided_slice %0 {offsets = [0, 8], sizes = [16, 1], strides = [1, 1]} : vector<16x16xi32> to vector<16x1xi32>
    %52 = vector.broadcast %51 : vector<16x1xi32> to vector<16x128xi32>
    %53 = arith.cmpi eq, %52, %2 : vector<16x128xi32>
    %54 = arith.extui %53 : vector<16x128xi1> to vector<16x128xi32>
    %55 = arith.sitofp %54 : vector<16x128xi32> to vector<16x128xf32>
    %56 = arith.truncf %55 : vector<16x128xf32> to vector<16x128xbf16>
    %57 = vector.extract_strided_slice %0 {offsets = [0, 9], sizes = [16, 1], strides = [1, 1]} : vector<16x16xi32> to vector<16x1xi32>
    %58 = vector.broadcast %57 : vector<16x1xi32> to vector<16x128xi32>
    %59 = arith.cmpi eq, %58, %2 : vector<16x128xi32>
    %60 = arith.extui %59 : vector<16x128xi1> to vector<16x128xi32>
    %61 = arith.sitofp %60 : vector<16x128xi32> to vector<16x128xf32>
    %62 = arith.truncf %61 : vector<16x128xf32> to vector<16x128xbf16>
    %63 = vector.extract_strided_slice %0 {offsets = [0, 10], sizes = [16, 1], strides = [1, 1]} : vector<16x16xi32> to vector<16x1xi32>
    %64 = vector.broadcast %63 : vector<16x1xi32> to vector<16x128xi32>
    %65 = arith.cmpi eq, %64, %2 : vector<16x128xi32>
    %66 = arith.extui %65 : vector<16x128xi1> to vector<16x128xi32>
    %67 = arith.sitofp %66 : vector<16x128xi32> to vector<16x128xf32>
    %68 = arith.truncf %67 : vector<16x128xf32> to vector<16x128xbf16>
    %69 = vector.extract_strided_slice %0 {offsets = [0, 11], sizes = [16, 1], strides = [1, 1]} : vector<16x16xi32> to vector<16x1xi32>
    %70 = vector.broadcast %69 : vector<16x1xi32> to vector<16x128xi32>
    %71 = arith.cmpi eq, %70, %2 : vector<16x128xi32>
    %72 = arith.extui %71 : vector<16x128xi1> to vector<16x128xi32>
    %73 = arith.sitofp %72 : vector<16x128xi32> to vector<16x128xf32>
    %74 = arith.truncf %73 : vector<16x128xf32> to vector<16x128xbf16>
    %75 = vector.extract_strided_slice %0 {offsets = [0, 12], sizes = [16, 1], strides = [1, 1]} : vector<16x16xi32> to vector<16x1xi32>
    %76 = vector.broadcast %75 : vector<16x1xi32> to vector<16x128xi32>
    %77 = arith.cmpi eq, %76, %2 : vector<16x128xi32>
    %78 = arith.extui %77 : vector<16x128xi1> to vector<16x128xi32>
    %79 = arith.sitofp %78 : vector<16x128xi32> to vector<16x128xf32>
    %80 = arith.truncf %79 : vector<16x128xf32> to vector<16x128xbf16>
    %81 = vector.extract_strided_slice %0 {offsets = [0, 13], sizes = [16, 1], strides = [1, 1]} : vector<16x16xi32> to vector<16x1xi32>
    %82 = vector.broadcast %81 : vector<16x1xi32> to vector<16x128xi32>
    %83 = arith.cmpi eq, %82, %2 : vector<16x128xi32>
    %84 = arith.extui %83 : vector<16x128xi1> to vector<16x128xi32>
    %85 = arith.sitofp %84 : vector<16x128xi32> to vector<16x128xf32>
    %86 = arith.truncf %85 : vector<16x128xf32> to vector<16x128xbf16>
    %87 = vector.extract_strided_slice %0 {offsets = [0, 14], sizes = [16, 1], strides = [1, 1]} : vector<16x16xi32> to vector<16x1xi32>
    %88 = vector.broadcast %87 : vector<16x1xi32> to vector<16x128xi32>
    %89 = arith.cmpi eq, %88, %2 : vector<16x128xi32>
    %90 = arith.extui %89 : vector<16x128xi1> to vector<16x128xi32>
    %91 = arith.sitofp %90 : vector<16x128xi32> to vector<16x128xf32>
    %92 = arith.truncf %91 : vector<16x128xf32> to vector<16x128xbf16>
    %93 = vector.extract_strided_slice %0 {offsets = [0, 15], sizes = [16, 1], strides = [1, 1]} : vector<16x16xi32> to vector<16x1xi32>
    %94 = vector.broadcast %93 : vector<16x1xi32> to vector<16x128xi32>
    %95 = arith.cmpi eq, %94, %2 : vector<16x128xi32>
    %96 = arith.extui %95 : vector<16x128xi1> to vector<16x128xi32>
    %97 = arith.sitofp %96 : vector<16x128xi32> to vector<16x128xf32>
    %98 = arith.truncf %97 : vector<16x128xf32> to vector<16x128xbf16>
    %99 = tpu.concatenate %8, %14, %20, %26, %32, %38, %44, %50, %56, %62, %68, %74, %80, %86, %92, %98 in 0 : vector<16x128xbf16>, vector<16x128xbf16>, vector<16x128xbf16>, vector<16x128xbf16>, vector<16x128xbf16>, vector<16x128xbf16>, vector<16x128xbf16>, vector<16x128xbf16>, vector<16x128xbf16>, vector<16x128xbf16>, vector<16x128xbf16>, vector<16x128xbf16>, vector<16x128xbf16>, vector<16x128xbf16>, vector<16x128xbf16>, vector<16x128xbf16> -> vector<256x128xbf16>
    %cst = arith.constant dense<0.000000e+00> : vector<256x32xf32>
    %100 = tpu.matmul %99, %1, %cst {dimension_numbers = #tpu.dot_dimension_numbers<[1], [0], [0], [1], [0, 0, 1, 1], [], []>} : vector<256x128xbf16>, vector<128x32xbf16>, vector<256x32xf32> -> vector<256x32xf32>
    %101 = arith.truncf %100 : vector<256x32xf32> to vector<256x32xbf16>
    %cst_3 = arith.constant 0.000000e+00 : bf16
    %102 = vector.broadcast %cst_3 : bf16 to vector<16x32xbf16>
    %103 = vector.extract_strided_slice %101 {offsets = [0, 0], sizes = [16, 32], strides = [1, 1]} : vector<256x32xbf16> to vector<16x32xbf16>
    %104 = vector.extract_strided_slice %101 {offsets = [16, 0], sizes = [16, 32], strides = [1, 1]} : vector<256x32xbf16> to vector<16x32xbf16>
    %105 = tpu.concatenate %102, %102, %103, %104 in 1 : vector<16x32xbf16>, vector<16x32xbf16>, vector<16x32xbf16>, vector<16x32xbf16> -> vector<16x128xbf16>
    %106 = vector.extract_strided_slice %101 {offsets = [0, 0], sizes = [16, 32], strides = [1, 1]} : vector<256x32xbf16> to vector<16x32xbf16>
    %107 = vector.extract_strided_slice %101 {offsets = [16, 0], sizes = [16, 32], strides = [1, 1]} : vector<256x32xbf16> to vector<16x32xbf16>
    %108 = vector.extract_strided_slice %101 {offsets = [32, 0], sizes = [16, 32], strides = [1, 1]} : vector<256x32xbf16> to vector<16x32xbf16>
    %109 = tpu.concatenate %102, %106, %107, %108 in 1 : vector<16x32xbf16>, vector<16x32xbf16>, vector<16x32xbf16>, vector<16x32xbf16> -> vector<16x128xbf16>
    %110 = vector.extract_strided_slice %101 {offsets = [0, 0], sizes = [16, 32], strides = [1, 1]} : vector<256x32xbf16> to vector<16x32xbf16>
    %111 = vector.extract_strided_slice %101 {offsets = [16, 0], sizes = [16, 32], strides = [1, 1]} : vector<256x32xbf16> to vector<16x32xbf16>
    %112 = vector.extract_strided_slice %101 {offsets = [32, 0], sizes = [16, 32], strides = [1, 1]} : vector<256x32xbf16> to vector<16x32xbf16>
    %113 = vector.extract_strided_slice %101 {offsets = [48, 0], sizes = [16, 32], strides = [1, 1]} : vector<256x32xbf16> to vector<16x32xbf16>
    %114 = tpu.concatenate %110, %111, %112, %113 in 1 : vector<16x32xbf16>, vector<16x32xbf16>, vector<16x32xbf16>, vector<16x32xbf16> -> vector<16x128xbf16>
    %115 = vector.extract_strided_slice %101 {offsets = [16, 0], sizes = [16, 32], strides = [1, 1]} : vector<256x32xbf16> to vector<16x32xbf16>
    %116 = vector.extract_strided_slice %101 {offsets = [32, 0], sizes = [16, 32], strides = [1, 1]} : vector<256x32xbf16> to vector<16x32xbf16>
    %117 = vector.extract_strided_slice %101 {offsets = [48, 0], sizes = [16, 32], strides = [1, 1]} : vector<256x32xbf16> to vector<16x32xbf16>
    %118 = vector.extract_strided_slice %101 {offsets = [64, 0], sizes = [16, 32], strides = [1, 1]} : vector<256x32xbf16> to vector<16x32xbf16>
    %119 = tpu.concatenate %115, %116, %117, %118 in 1 : vector<16x32xbf16>, vector<16x32xbf16>, vector<16x32xbf16>, vector<16x32xbf16> -> vector<16x128xbf16>
    %120 = vector.extract_strided_slice %101 {offsets = [32, 0], sizes = [16, 32], strides = [1, 1]} : vector<256x32xbf16> to vector<16x32xbf16>
    %121 = vector.extract_strided_slice %101 {offsets = [48, 0], sizes = [16, 32], strides = [1, 1]} : vector<256x32xbf16> to vector<16x32xbf16>
    %122 = vector.extract_strided_slice %101 {offsets = [64, 0], sizes = [16, 32], strides = [1, 1]} : vector<256x32xbf16> to vector<16x32xbf16>
    %123 = vector.extract_strided_slice %101 {offsets = [80, 0], sizes = [16, 32], strides = [1, 1]} : vector<256x32xbf16> to vector<16x32xbf16>
    %124 = tpu.concatenate %120, %121, %122, %123 in 1 : vector<16x32xbf16>, vector<16x32xbf16>, vector<16x32xbf16>, vector<16x32xbf16> -> vector<16x128xbf16>
    %125 = vector.extract_strided_slice %101 {offsets = [48, 0], sizes = [16, 32], strides = [1, 1]} : vector<256x32xbf16> to vector<16x32xbf16>
    %126 = vector.extract_strided_slice %101 {offsets = [64, 0], sizes = [16, 32], strides = [1, 1]} : vector<256x32xbf16> to vector<16x32xbf16>
    %127 = vector.extract_strided_slice %101 {offsets = [80, 0], sizes = [16, 32], strides = [1, 1]} : vector<256x32xbf16> to vector<16x32xbf16>
    %128 = vector.extract_strided_slice %101 {offsets = [96, 0], sizes = [16, 32], strides = [1, 1]} : vector<256x32xbf16> to vector<16x32xbf16>
    %129 = tpu.concatenate %125, %126, %127, %128 in 1 : vector<16x32xbf16>, vector<16x32xbf16>, vector<16x32xbf16>, vector<16x32xbf16> -> vector<16x128xbf16>
    %130 = vector.extract_strided_slice %101 {offsets = [64, 0], sizes = [16, 32], strides = [1, 1]} : vector<256x32xbf16> to vector<16x32xbf16>
    %131 = vector.extract_strided_slice %101 {offsets = [80, 0], sizes = [16, 32], strides = [1, 1]} : vector<256x32xbf16> to vector<16x32xbf16>
    %132 = vector.extract_strided_slice %101 {offsets = [96, 0], sizes = [16, 32], strides = [1, 1]} : vector<256x32xbf16> to vector<16x32xbf16>
    %133 = vector.extract_strided_slice %101 {offsets = [112, 0], sizes = [16, 32], strides = [1, 1]} : vector<256x32xbf16> to vector<16x32xbf16>
    %134 = tpu.concatenate %130, %131, %132, %133 in 1 : vector<16x32xbf16>, vector<16x32xbf16>, vector<16x32xbf16>, vector<16x32xbf16> -> vector<16x128xbf16>
    %135 = vector.extract_strided_slice %101 {offsets = [80, 0], sizes = [16, 32], strides = [1, 1]} : vector<256x32xbf16> to vector<16x32xbf16>
    %136 = vector.extract_strided_slice %101 {offsets = [96, 0], sizes = [16, 32], strides = [1, 1]} : vector<256x32xbf16> to vector<16x32xbf16>
    %137 = vector.extract_strided_slice %101 {offsets = [112, 0], sizes = [16, 32], strides = [1, 1]} : vector<256x32xbf16> to vector<16x32xbf16>
    %138 = vector.extract_strided_slice %101 {offsets = [128, 0], sizes = [16, 32], strides = [1, 1]} : vector<256x32xbf16> to vector<16x32xbf16>
    %139 = tpu.concatenate %135, %136, %137, %138 in 1 : vector<16x32xbf16>, vector<16x32xbf16>, vector<16x32xbf16>, vector<16x32xbf16> -> vector<16x128xbf16>
    %140 = vector.extract_strided_slice %101 {offsets = [96, 0], sizes = [16, 32], strides = [1, 1]} : vector<256x32xbf16> to vector<16x32xbf16>
    %141 = vector.extract_strided_slice %101 {offsets = [112, 0], sizes = [16, 32], strides = [1, 1]} : vector<256x32xbf16> to vector<16x32xbf16>
    %142 = vector.extract_strided_slice %101 {offsets = [128, 0], sizes = [16, 32], strides = [1, 1]} : vector<256x32xbf16> to vector<16x32xbf16>
    %143 = vector.extract_strided_slice %101 {offsets = [144, 0], sizes = [16, 32], strides = [1, 1]} : vector<256x32xbf16> to vector<16x32xbf16>
    %144 = tpu.concatenate %140, %141, %142, %143 in 1 : vector<16x32xbf16>, vector<16x32xbf16>, vector<16x32xbf16>, vector<16x32xbf16> -> vector<16x128xbf16>
    %145 = vector.extract_strided_slice %101 {offsets = [112, 0], sizes = [16, 32], strides = [1, 1]} : vector<256x32xbf16> to vector<16x32xbf16>
    %146 = vector.extract_strided_slice %101 {offsets = [128, 0], sizes = [16, 32], strides = [1, 1]} : vector<256x32xbf16> to vector<16x32xbf16>
    %147 = vector.extract_strided_slice %101 {offsets = [144, 0], sizes = [16, 32], strides = [1, 1]} : vector<256x32xbf16> to vector<16x32xbf16>
    %148 = vector.extract_strided_slice %101 {offsets = [160, 0], sizes = [16, 32], strides = [1, 1]} : vector<256x32xbf16> to vector<16x32xbf16>
    %149 = tpu.concatenate %145, %146, %147, %148 in 1 : vector<16x32xbf16>, vector<16x32xbf16>, vector<16x32xbf16>, vector<16x32xbf16> -> vector<16x128xbf16>
    %150 = vector.extract_strided_slice %101 {offsets = [128, 0], sizes = [16, 32], strides = [1, 1]} : vector<256x32xbf16> to vector<16x32xbf16>
    %151 = vector.extract_strided_slice %101 {offsets = [144, 0], sizes = [16, 32], strides = [1, 1]} : vector<256x32xbf16> to vector<16x32xbf16>
    %152 = vector.extract_strided_slice %101 {offsets = [160, 0], sizes = [16, 32], strides = [1, 1]} : vector<256x32xbf16> to vector<16x32xbf16>
    %153 = vector.extract_strided_slice %101 {offsets = [176, 0], sizes = [16, 32], strides = [1, 1]} : vector<256x32xbf16> to vector<16x32xbf16>
    %154 = tpu.concatenate %150, %151, %152, %153 in 1 : vector<16x32xbf16>, vector<16x32xbf16>, vector<16x32xbf16>, vector<16x32xbf16> -> vector<16x128xbf16>
    %155 = vector.extract_strided_slice %101 {offsets = [144, 0], sizes = [16, 32], strides = [1, 1]} : vector<256x32xbf16> to vector<16x32xbf16>
    %156 = vector.extract_strided_slice %101 {offsets = [160, 0], sizes = [16, 32], strides = [1, 1]} : vector<256x32xbf16> to vector<16x32xbf16>
    %157 = vector.extract_strided_slice %101 {offsets = [176, 0], sizes = [16, 32], strides = [1, 1]} : vector<256x32xbf16> to vector<16x32xbf16>
    %158 = vector.extract_strided_slice %101 {offsets = [192, 0], sizes = [16, 32], strides = [1, 1]} : vector<256x32xbf16> to vector<16x32xbf16>
    %159 = tpu.concatenate %155, %156, %157, %158 in 1 : vector<16x32xbf16>, vector<16x32xbf16>, vector<16x32xbf16>, vector<16x32xbf16> -> vector<16x128xbf16>
    %160 = vector.extract_strided_slice %101 {offsets = [160, 0], sizes = [16, 32], strides = [1, 1]} : vector<256x32xbf16> to vector<16x32xbf16>
    %161 = vector.extract_strided_slice %101 {offsets = [176, 0], sizes = [16, 32], strides = [1, 1]} : vector<256x32xbf16> to vector<16x32xbf16>
    %162 = vector.extract_strided_slice %101 {offsets = [192, 0], sizes = [16, 32], strides = [1, 1]} : vector<256x32xbf16> to vector<16x32xbf16>
    %163 = vector.extract_strided_slice %101 {offsets = [208, 0], sizes = [16, 32], strides = [1, 1]} : vector<256x32xbf16> to vector<16x32xbf16>
    %164 = tpu.concatenate %160, %161, %162, %163 in 1 : vector<16x32xbf16>, vector<16x32xbf16>, vector<16x32xbf16>, vector<16x32xbf16> -> vector<16x128xbf16>
    %165 = vector.extract_strided_slice %101 {offsets = [176, 0], sizes = [16, 32], strides = [1, 1]} : vector<256x32xbf16> to vector<16x32xbf16>
    %166 = vector.extract_strided_slice %101 {offsets = [192, 0], sizes = [16, 32], strides = [1, 1]} : vector<256x32xbf16> to vector<16x32xbf16>
    %167 = vector.extract_strided_slice %101 {offsets = [208, 0], sizes = [16, 32], strides = [1, 1]} : vector<256x32xbf16> to vector<16x32xbf16>
    %168 = vector.extract_strided_slice %101 {offsets = [224, 0], sizes = [16, 32], strides = [1, 1]} : vector<256x32xbf16> to vector<16x32xbf16>
    %169 = tpu.concatenate %165, %166, %167, %168 in 1 : vector<16x32xbf16>, vector<16x32xbf16>, vector<16x32xbf16>, vector<16x32xbf16> -> vector<16x128xbf16>
    %170 = vector.extract_strided_slice %101 {offsets = [192, 0], sizes = [16, 32], strides = [1, 1]} : vector<256x32xbf16> to vector<16x32xbf16>
    %171 = vector.extract_strided_slice %101 {offsets = [208, 0], sizes = [16, 32], strides = [1, 1]} : vector<256x32xbf16> to vector<16x32xbf16>
    %172 = vector.extract_strided_slice %101 {offsets = [224, 0], sizes = [16, 32], strides = [1, 1]} : vector<256x32xbf16> to vector<16x32xbf16>
    %173 = vector.extract_strided_slice %101 {offsets = [240, 0], sizes = [16, 32], strides = [1, 1]} : vector<256x32xbf16> to vector<16x32xbf16>
    %174 = tpu.concatenate %170, %171, %172, %173 in 1 : vector<16x32xbf16>, vector<16x32xbf16>, vector<16x32xbf16>, vector<16x32xbf16> -> vector<16x128xbf16>
    %175 = vector.extract_strided_slice %101 {offsets = [208, 0], sizes = [16, 32], strides = [1, 1]} : vector<256x32xbf16> to vector<16x32xbf16>
    %176 = vector.extract_strided_slice %101 {offsets = [224, 0], sizes = [16, 32], strides = [1, 1]} : vector<256x32xbf16> to vector<16x32xbf16>
    %177 = vector.extract_strided_slice %101 {offsets = [240, 0], sizes = [16, 32], strides = [1, 1]} : vector<256x32xbf16> to vector<16x32xbf16>
    %178 = tpu.concatenate %175, %176, %177, %102 in 1 : vector<16x32xbf16>, vector<16x32xbf16>, vector<16x32xbf16>, vector<16x32xbf16> -> vector<16x128xbf16>
    %179 = vector.extract_strided_slice %101 {offsets = [224, 0], sizes = [16, 32], strides = [1, 1]} : vector<256x32xbf16> to vector<16x32xbf16>
    %180 = vector.extract_strided_slice %101 {offsets = [240, 0], sizes = [16, 32], strides = [1, 1]} : vector<256x32xbf16> to vector<16x32xbf16>
    %181 = tpu.concatenate %179, %180, %102, %102 in 1 : vector<16x32xbf16>, vector<16x32xbf16>, vector<16x32xbf16>, vector<16x32xbf16> -> vector<16x128xbf16>
    %182 = tpu.concatenate %105, %109, %114, %119, %124, %129, %134, %139, %144, %149, %154, %159, %164, %169, %174, %178 in 0 : vector<16x128xbf16>, vector<16x128xbf16>, vector<16x128xbf16>, vector<16x128xbf16>, vector<16x128xbf16>, vector<16x128xbf16>, vector<16x128xbf16>, vector<16x128xbf16>, vector<16x128xbf16>, vector<16x128xbf16>, vector<16x128xbf16>, vector<16x128xbf16>, vector<16x128xbf16>, vector<16x128xbf16>, vector<16x128xbf16>, vector<16x128xbf16> -> vector<256x128xbf16>
    %183 = tpu.concatenate %182, %181 in 0 : vector<256x128xbf16>, vector<16x128xbf16> -> vector<272x128xbf16>
    %c0_4 = arith.constant 0 : index
    %c0_5 = arith.constant 0 : index
    %184 = vector.load %arg3[%c0_4, %c0_5] : memref<128x32xbf16, #tpu.memory_space<vmem>>, vector<128x32xbf16>
    %cst_6 = arith.constant dense<0.000000e+00> : vector<272x32xf32>
    %185 = tpu.matmul %183, %184, %cst_6 {dimension_numbers = #tpu.dot_dimension_numbers<[1], [0], [0], [1], [0, 0, 1, 1], [], []>} : vector<272x128xbf16>, vector<128x32xbf16>, vector<272x32xf32> -> vector<272x32xf32>
    %186 = vector.shape_cast %185 : vector<272x32xf32> to vector<17x16x32xf32>
    %cst_7 = arith.constant dense<0xFF800000> : vector<16x32xf32>
    %187 = vector.multi_reduction <maximumf>, %186, %cst_7 [0] : vector<17x16x32xf32> to vector<16x32xf32>
    %c0_8 = arith.constant 0 : index
    %c0_9 = arith.constant 0 : index
    %188 = vector.load %arg4[%c0_8, %c0_9] : memref<1x32xf32, #tpu.memory_space<vmem>>, vector<1x32xf32>
    %189 = vector.broadcast %188 : vector<1x32xf32> to vector<16x32xf32>
    %190 = arith.addf %187, %189 : vector<16x32xf32>
    %191 = math.tanh %190 : vector<16x32xf32>
    %c0_10 = arith.constant 0 : index
    %c0_11 = arith.constant 0 : index
    %192 = vector.load %arg5[%c0_10, %c0_11] : memref<8x32xf32, #tpu.memory_space<vmem>>, vector<8x32xf32>
    %cst_12 = arith.constant dense<0.000000e+00> : vector<8x16xf32>
    %193 = tpu.matmul %192, %191, %cst_12 {dimension_numbers = #tpu.dot_dimension_numbers<[1], [1], [0], [0], [0, 0, 1, 0], [], []>} : vector<8x32xf32>, vector<16x32xf32>, vector<8x16xf32> -> vector<8x16xf32>
    %c0_13 = arith.constant 0 : index
    %c0_14 = arith.constant 0 : index
    %194 = vector.load %arg6[%c0_13, %c0_14] : memref<8x1xf32, #tpu.memory_space<vmem>>, vector<8x1xf32>
    %195 = vector.broadcast %194 : vector<8x1xf32> to vector<8x16xf32>
    %196 = arith.addf %193, %195 : vector<8x16xf32>
    %197 = arith.negf %196 : vector<8x16xf32>
    %198 = math.exp %197 : vector<8x16xf32>
    %cst_15 = arith.constant 1.000000e+00 : f32
    %199 = vector.broadcast %cst_15 : f32 to vector<8x16xf32>
    %200 = arith.addf %199, %198 : vector<8x16xf32>
    %201 = arith.divf %199, %200 : vector<8x16xf32>
    %c0_16 = arith.constant 0 : index
    %c0_17 = arith.constant 0 : index
    %202 = vector.load %arg7[%c0_16, %c0_17] : memref<8x16xf32, #tpu.memory_space<vmem>>, vector<8x16xf32>
    tpu.vector_store %arg7[%c0_16, %c0_17], %201 {strides = array<i32>} : memref<8x16xf32, #tpu.memory_space<vmem>>, vector<8x16xf32>,
    return
  }
  func.func @transform_0(%arg0: i32) -> (i32, i32) {
    %c0_i32 = arith.constant 0 : i32
    %c0_i32_0 = arith.constant 0 : i32
    return %arg0, %c0_i32 : i32, i32
  }
  func.func @transform_1(%arg0: i32) -> (i32, i32) {
    %c0_i32 = arith.constant 0 : i32
    %c0_i32_0 = arith.constant 0 : i32
    %c0_i32_1 = arith.constant 0 : i32
    return %c0_i32, %c0_i32_0 : i32, i32
  }
  func.func @transform_2(%arg0: i32) -> (i32, i32) {
    %c0_i32 = arith.constant 0 : i32
    %c0_i32_0 = arith.constant 0 : i32
    %c0_i32_1 = arith.constant 0 : i32
    return %c0_i32, %c0_i32_0 : i32, i32
  }
  func.func @transform_3(%arg0: i32) -> (i32, i32) {
    %c0_i32 = arith.constant 0 : i32
    %c0_i32_0 = arith.constant 0 : i32
    %c0_i32_1 = arith.constant 0 : i32
    return %c0_i32, %c0_i32_0 : i32, i32
  }
  func.func @transform_4(%arg0: i32) -> (i32, i32) {
    %c0_i32 = arith.constant 0 : i32
    %c0_i32_0 = arith.constant 0 : i32
    %c0_i32_1 = arith.constant 0 : i32
    return %c0_i32, %c0_i32_0 : i32, i32
  }
  func.func @transform_5(%arg0: i32) -> (i32, i32) {
    %c0_i32 = arith.constant 0 : i32
    %c0_i32_0 = arith.constant 0 : i32
    %c0_i32_1 = arith.constant 0 : i32
    return %c0_i32, %c0_i32_0 : i32, i32
  }
  func.func @transform_6(%arg0: i32) -> (i32, i32) {
    %c0_i32 = arith.constant 0 : i32
    %c0_i32_0 = arith.constant 0 : i32
    return %c0_i32, %arg0 : i32, i32
  }
}

</mosaic_0001>

<bundles_post_ra>
// kernel: cnn_forward.1
= control target key start
LH: loop header
LB: loop body
LE: loop exit
PB: predicated region body
PF: predicated region fallthrough
CT: control target
= control target key end

     0   :  { %v1537_v1 = vmov 1   ;;  %v1538_v2 = vmov 0   ;;  %v1539_v7 = vmov 2   ;;  %v1540_v9 = vmov 3   ;;  %s2065_s0 = inlined_call_operand.vmem [shape: s32[16,16], index: 0, kind: input, shape index: {}]   ;;  %s2066_s1 = inlined_call_operand.vmem [shape: bf16[128,32], index: 1, kind: input, shape index: {}]   ;;  %s2067_s2 = inlined_call_operand.vmem [shape: bf16[128,32], index: 2, kind: input, shape index: {}]   ;;  %s2068_s3 = inlined_call_operand.vmem [shape: f32[1,32], index: 3, kind: input, shape index: {}]   ;;  %s2069_s4 = inlined_call_operand.vmem [shape: f32[8,32], index: 4, kind: input, shape index: {}]   ;;  %s2070_s5 = inlined_call_operand.vmem [shape: f32[8,1], index: 5, kind: input, shape index: {}]   ;;  %s2071_s6 = inlined_call_operand.hbm [shape: f32[8,16], index: 6, kind: output, shape index: {}]  }
   0x1   :  { %v1599_v0 = vld [vmem:[%s2065_s0] sm:$0xff]  ;;  %1462 = vset.pattern.permute.xlu1 %v1537_v1  ;;  %1461 = vset.pattern.permute.xlu0 %v1538_v2  ;;  %v1607_v3 = vld [vmem:[%s2065_s0 + $0x8] sm:$0xff]  ;;  %v1491_v6 = vld [vmem:[%s2066_s1 + $0x10] sm:$0xff]  }
   0x2   :  { %59 = vperm.xlu1 %1462, %v1599_v0   ;;  %46 = vperm.xlu0 %1461, %v1599_v0   ;;  %v1489_v4 = vld [vmem:[%s2066_s1] sm:$0xff]   ;;  %v1490_v5 = vld [vmem:[%s2066_s1 + $0x8] sm:$0xff]   ;;  %v1492_v8 = vld [vmem:[%s2066_s1 + $0x18] sm:$0xff]  }
   0x3   :  { %1278 = vmatprep.subr.bf16.mxu0 %v1489_v4 }
   0x4   :  { %1279 = vmatpush3.bf16.msra.mxu0 %v1489_v4 }
   0x5   :  { %1280 = vmatprep.subr.bf16.mxu0 %v1490_v5 }
   0x6   :  { %62 = vperm.xlu1 %1462, %v1607_v3   ;;  %49 = vperm.xlu0 %1461, %v1607_v3  }
   0x8   :  { %1281 = vmatpush3.bf16.msra.mxu0 %v1490_v5 }
   0x9   :  { %1282 = vmatprep.subr.bf16.mxu0 %v1491_v6 }
   0xa   :  { %1464 = vset.pattern.permute.xlu1 %v1539_v7  ;;  %1463 = vset.pattern.permute.xlu0 %v1539_v7 }
   0xb   :  { %75 = vperm.xlu1 %1464, %v1607_v3   ;;  %72 = vperm.xlu0 %1463, %v1599_v0  }
   0xf   :  { %1465 = vset.pattern.permute.xlu1 %v1540_v9  ;;  %1466 = vset.pattern.permute.xlu0 %v1540_v9 }
  0x10   :  { %85 = vperm.xlu1 %1465, %v1599_v0   ;;  %88 = vperm.xlu0 %1466, %v1607_v3  }
  0x11   :  { %11 = vsyncpa [#allocation3], 0  ;;  %1283 = vmatpush3.bf16.msra.mxu0 %v1491_v6  ;;  %v1493_v10 = vld [vmem:[%s2066_s1 + $0x20] sm:$0xff]   ;;  %v1541_v11 = vmov 4   ;;  %v1542_v12 = vmov 5   ;;  %v1494_v13 = vld [vmem:[%s2066_s1 + $0x28] sm:$0xff]   ;;  %v43_v26 = vlaneseq }
  0x12   :  { %1284 = vmatprep.subr.bf16.mxu0 %v1492_v8  ;;  %v1543_v14 = vmov 6   ;;  %v1495_v15 = vld [vmem:[%s2066_s1 + $0x30] sm:$0xff]   ;;  %v1544_v16 = vmov 8   ;;  %v1496_v17 = vld [vmem:[%s2066_s1 + $0x38] sm:$0xff]   ;;  %v1545_v18 = vmov 9   ;;  %v1546_v19 = vmov 7  }
  0x13   :  { %v1547_v20 = vmov 11   ;;  %v1548_v21 = vmov 12   ;;  %v1549_v22 = vmov 14   ;;  %v1550_v23 = vmov 15   ;;  %v1497_v62 = vld [vmem:[%s2067_s2] sm:$0xff]   ;;  %v1498_v63 = vld [vmem:[%s2067_s2 + $0x8] sm:$0xff]  }
  0x14   :  { %1467 = vset.pattern.permute.xlu1 %v1541_v11  ;;  %1468 = vset.pattern.permute.xlu0 %v1542_v12  ;;  %v1551_v24 = vmov 10   ;;  %v1552_v25 = vmov 13   ;;  %v1665_v29 = vand.u32 127, %v43_v26  ;;  %v1553_v32 = vmov 1.0|1.0   ;;  %v1500_v1 = vld [vmem:[%s2067_s2 + $0x18] sm:$0xff]  }
  0x15   :  { %98 = vperm.xlu1 %1467, %v1599_v0   ;;  %111 = vperm.xlu0 %1468, %v1599_v0   ;;  %v1554_v61 = vmov 0.0   ;;  %s1555_s29 = smov 32   ;;  %s1557_s7 = smov 96  }
  0x16   :  { %1285 = vmatpush3.bf16.msra.mxu0 %v1492_v8  ;;  %1421 = vmatprep.subr.bf16.mxu1 %v1554_v61  ;;  %v1502_v8 = vld [vmem:[%s2067_s2 + $0x28] sm:$0xff]   ;;  %s1560_s12 = smov [#allocation2]  }
  0x17   :  { %1286 = vmatprep.subr.bf16.mxu0 %v1493_v10  ;;  %1429 = vmatpush3.bf16.msra.mxu1 %v1497_v62  ;;  %s1131_s13 = sshll.u32 %s1560_s12, 4  ;;  %s1132_s13 = int_to_ptr.vmem [resolvable:$true] %s1131_s13 }
  0x18   :  { %1422 = vmatprep.subr.bf16.mxu1 %v1554_v61  ;;  %s1513_s14 = scalar_lea.vmem %s1132_s13, 128  ;;  %p1518_p1 = scmp.lt.s32.totalorder %s1132_s13, %s1132_s13 }
  0x19   :  { %101 = vperm.xlu1 %1467, %v1607_v3   ;;  %1471 = vset.pattern.permute.xlu0 %v1543_v14  ;;  %p1514_p0 = scmp.ne.s32.totalorder %s1132_s13, %s1513_s14  ;;  %p1519_p2 = scmp.lt.s32.totalorder %s1513_s14, %s1513_s14 }
  0x1a   :  { %127 = vperm.xlu0 %1471, %v1607_v3   ;;  %1287 = vmatpush3.bf16.msra.mxu0 %v1493_v10  ;;  %v1503_v10 = vld [vmem:[%s2067_s2 + $0x30] sm:$0xff]  }
  0x1b   :  { %1288 = vmatprep.subr.bf16.mxu0 %v1494_v13  ;;  %1430 = vmatpush3.bf16.msra.mxu1 %v1498_v63  ;;  %p1520_p3 = por %p1519_p2, %p1518_p1 }
  0x1c   :  { %1423 = vmatprep.subr.bf16.mxu1 %v1554_v61 }
  0x1d   :  { %1469 = vset.pattern.permute.xlu1 %v1542_v12  ;;  %p1521_p4 = pnand %p1520_p3, %p1514_p0 }
  0x1e   :  { %114 = vperm.xlu1 %1469, %v1607_v3   ;;  %1473 = vset.pattern.permute.xlu0 %v1544_v16 }
  0x1f   :  { %150 = vperm.xlu0 %1473, %v1599_v0   ;;  %1289 = vmatpush3.bf16.msra.mxu0 %v1494_v13 }
  0x20   :  { %1290 = vmatprep.subr.bf16.mxu0 %v1495_v15 }
  0x22   :  { %1470 = vset.pattern.permute.xlu1 %v1543_v14 }
  0x23   :  { %124 = vperm.xlu1 %1470, %v1599_v0   ;;  %1476 = vset.pattern.permute.xlu0 %v1545_v18 }
  0x24   :  { %166 = vperm.xlu0 %1476, %v1607_v3   ;;  %1291 = vmatpush3.bf16.msra.mxu0 %v1495_v15 }
  0x25   :  { %1292 = vmatprep.subr.bf16.mxu0 %v1496_v17 }
  0x27   :  { %1472 = vset.pattern.permute.xlu1 %v1546_v19 }
  0x28   :  { %137 = vperm.xlu1 %1472, %v1599_v0   ;;  %1478 = vset.pattern.permute.xlu0 %v1547_v20 }
  0x29   :  { %189 = vperm.xlu0 %1478, %v1599_v0   ;;  %1293 = vmatpush3.bf16.msra.mxu0 %v1496_v17  ;;  %v1504_v17 = vld [vmem:[%s2067_s2 + $0x38] sm:$0xff]  }
  0x2a   :  { %1326 = vmatprep.subr.bf16.mxu0 %v1554_v61 }
  0x2c   :  { %140 = vperm.xlu1 %1472, %v1607_v3  }
  0x2d   :  { %1481 = vset.pattern.permute.xlu0 %v1548_v21 }
  0x2e   :  { %205 = vperm.xlu0 %1481, %v1607_v3  }
  0x30   :  { %1474 = vset.pattern.permute.xlu1 %v1544_v16 }
  0x31   :  { %153 = vperm.xlu1 %1474, %v1607_v3  }
  0x32   :  { %1483 = vset.pattern.permute.xlu0 %v1549_v22 }
  0x33   :  { %228 = vperm.xlu0 %1483, %v1599_v0  }
  0x35   :  { %1475 = vset.pattern.permute.xlu1 %v1545_v18 }
  0x36   :  { %163 = vperm.xlu1 %1475, %v1599_v0  }
  0x37   :  { %1486 = vset.pattern.permute.xlu0 %v1550_v23 }
  0x38   :  { %244 = vperm.xlu0 %1486, %v1607_v3  }
  0x3a   :  { %1477 = vset.pattern.permute.xlu1 %v1551_v24 }
  0x3b   :  { %176 = vperm.xlu1 %1477, %v1599_v0  }
  0x3c   :  { %1488 = vset.pattern.permute.xlu0 %v1538_v2 }
  0x3f   :  { %179 = vperm.xlu1 %1477, %v1607_v3  }
  0x43   :  { %1479 = vset.pattern.permute.xlu1 %v1547_v20 }
  0x44   :  { %192 = vperm.xlu1 %1479, %v1607_v3  }
  0x48   :  { %1480 = vset.pattern.permute.xlu1 %v1548_v21 }
  0x49   :  { %202 = vperm.xlu1 %1480, %v1599_v0  }
  0x4d   :  { %1482 = vset.pattern.permute.xlu1 %v1552_v25 }
  0x4e   :  { %215 = vperm.xlu1 %1482, %v1599_v0  }
  0x52   :  { %218 = vperm.xlu1 %1482, %v1607_v3  }
  0x56   :  { %1484 = vset.pattern.permute.xlu1 %v1549_v22 }
  0x57   :  { %231 = vperm.xlu1 %1484, %v1607_v3   ;;  %v1501_v3 = vld [vmem:[%s2067_s2 + $0x20] sm:$0xff]  }
  0x5b   :  { %1485 = vset.pattern.permute.xlu1 %v1550_v23 }
  0x5c   :  { %241 = vperm.xlu1 %1485, %v1599_v0   ;;  %v1499_v0 = vld [vmem:[%s2067_s2 + $0x10] sm:$0xff]   ;;  %s1558_s2 = smov 64  }
  0x5d   :  { %1431 = vmatpush3.bf16.msra.mxu1 %v1499_v0 }
  0x5e   :  { %1424 = vmatprep.subr.bf16.mxu1 %v1554_v61 }
  0x60   :  { %1487 = vset.pattern.permute.xlu1 %v1538_v2 }
  0x61   :  { %1432 = vmatpush3.bf16.msra.mxu1 %v1500_v1 }
  0x62   :  { %1425 = vmatprep.subr.bf16.mxu1 %v1554_v61 }
  0x65   :  { %1433 = vmatpush3.bf16.msra.mxu1 %v1501_v3 }
  0x66   :  { %1426 = vmatprep.subr.bf16.mxu1 %v1554_v61 }
  0x69   :  { %1434 = vmatpush3.bf16.msra.mxu1 %v1502_v8 }
  0x6a   :  { %1427 = vmatprep.subr.bf16.mxu1 %v1554_v61 }
  0x6d   :  { %1435 = vmatpush3.bf16.msra.mxu1 %v1503_v10 }
  0x6e   :  { %1428 = vmatprep.subr.bf16.mxu1 %v1554_v61 }
  0x71   :  { %1436 = vmatpush3.bf16.msra.mxu1 %v1504_v17 }
  0x81   :  { %v60_v27 = vpop.permute.xlu1 %59  ;;  %v47_v28 = vpop.permute.xlu0 %46 }
  0x82   :  { %vm51_vm0 = vcmp.eq.s32.totalorder %v47_v28, %v1665_v29  ;;  %vm64_vm1 = vcmp.eq.s32.totalorder %v60_v27, %v1665_v29 }
  0x85   :  { %v63_v30 = vpop.permute.xlu1 %62  ;;  %v50_v31 = vpop.permute.xlu0 %49 }
  0x86   :  { %vm65_vm2 = vcmp.eq.s32.totalorder %v63_v30, %v1665_v29  ;;  %vm52_vm3 = vcmp.eq.s32.totalorder %v50_v31, %v1665_v29 }
  0x87   :  { %vm1181_vm4 = vmpackc.low %vm65_vm2, %vm64_vm1 }
  0x88   :  { %vm1179_vm5 = vmpackc.low %vm52_vm3, %vm51_vm0 }
  0x89   :  { %1294 = vmatprep.mubr.msk.bf16.mxu0 %vm1179_vm5, %v1553_v32 }
  0x8a   :  { %1295 = vmatmul.mubr.msk.bf16.vlgmr.msra.gmra.mrb[0].mxu0 %vm1181_vm4, %v1553_v32  ;;  %v76_v33 = vpop.permute.xlu1 %75  ;;  %v73_v34 = vpop.permute.xlu0 %72 }
  0x8b   :  { %vm78_vm6 = vcmp.eq.s32.totalorder %v76_v33, %v1665_v29  ;;  %vm77_vm7 = vcmp.eq.s32.totalorder %v73_v34, %v1665_v29  ;;  %1327 = vmatpush3.bf16.msra.mxu0 %v1497_v62 }
  0x8c   :  { %vm1183_vm8 = vmpackc.low %vm78_vm6, %vm77_vm7  ;;  %1328 = vmatprep.subr.bf16.mxu0 %v1554_v61 }
  0x8d   :  { %1298 = vmatprep.mubr.msk.bf16.mxu0 %vm1183_vm8, %v1553_v32 }
  0x8f   :  { %v86_v35 = vpop.permute.xlu1 %85  ;;  %v89_v36 = vpop.permute.xlu0 %88  ;;  %1329 = vmatpush3.bf16.msra.mxu0 %v1498_v63 }
  0x90   :  { %vm90_vm9 = vcmp.eq.s32.totalorder %v86_v35, %v1665_v29  ;;  %vm91_vm10 = vcmp.eq.s32.totalorder %v89_v36, %v1665_v29  ;;  %1330 = vmatprep.subr.bf16.mxu0 %v1554_v61 }
  0x91   :  { %vm1185_vm11 = vmpackc.low %vm91_vm10, %vm90_vm9 }
  0x92   :  { %1299 = vmatmul.mubr.msk.bf16.gmra.mrb[4].mxu0 %vm1185_vm11, %v1553_v32 }
  0x93   :  { %1331 = vmatpush3.bf16.msra.mxu0 %v1499_v0 }
  0x94   :  { %v99_v37 = vpop.permute.xlu1 %98  ;;  %v112_v39 = vpop.permute.xlu0 %111  ;;  %1332 = vmatprep.subr.bf16.mxu0 %v1554_v61 }
  0x95   :  { %vm103_vm12 = vcmp.eq.s32.totalorder %v99_v37, %v1665_v29  ;;  %vm116_vm15 = vcmp.eq.s32.totalorder %v112_v39, %v1665_v29 }
  0x97   :  { %1333 = vmatpush3.bf16.msra.mxu0 %v1500_v1 }
  0x98   :  { %v102_v38 = vpop.permute.xlu1 %101  ;;  %1334 = vmatprep.subr.bf16.mxu0 %v1554_v61 }
  0x99   :  { %vm104_vm13 = vcmp.eq.s32.totalorder %v102_v38, %v1665_v29  ;;  %v128_v41 = vpop.permute.xlu0 %127 }
  0x9a   :  { %vm1187_vm14 = vmpackc.low %vm104_vm13, %vm103_vm12  ;;  %vm130_vm2 = vcmp.eq.s32.totalorder %v128_v41, %v1665_v29 }
  0x9b   :  { %1302 = vmatprep.mubr.msk.bf16.mxu0 %vm1187_vm14, %v1553_v32  ;;  %1335 = vmatpush3.bf16.msra.mxu0 %v1501_v3 }
  0x9c   :  { %1336 = vmatprep.subr.bf16.mxu0 %v1554_v61 }
  0x9d   :  { %v115_v40 = vpop.permute.xlu1 %114 }
  0x9e   :  { %vm117_vm0 = vcmp.eq.s32.totalorder %v115_v40, %v1665_v29  ;;  %v151_v45 = vpop.permute.xlu0 %150 }
  0x9f   :  { %vm1189_vm1 = vmpackc.low %vm117_vm0, %vm116_vm15  ;;  %vm155_vm8 = vcmp.eq.s32.totalorder %v151_v45, %v1665_v29  ;;  %1337 = vmatpush3.bf16.msra.mxu0 %v1502_v8 }
  0xa0   :  { %1303 = vmatmul.mubr.msk.bf16.gmra.mrb[8].mxu0 %vm1189_vm1, %v1553_v32  ;;  %1338 = vmatprep.subr.bf16.mxu0 %v1554_v61 }
  0xa2   :  { %v125_v42 = vpop.permute.xlu1 %124 }
  0xa3   :  { %vm129_vm3 = vcmp.eq.s32.totalorder %v125_v42, %v1665_v29  ;;  %v167_v47 = vpop.permute.xlu0 %166  ;;  %1339 = vmatpush3.bf16.msra.mxu0 %v1503_v10 }
  0xa4   :  { %vm1191_vm4 = vmpackc.low %vm130_vm2, %vm129_vm3  ;;  %vm169_vm11 = vcmp.eq.s32.totalorder %v167_v47, %v1665_v29  ;;  %1340 = vmatprep.subr.bf16.mxu0 %v1554_v61 }
  0xa5   :  { %1306 = vmatprep.mubr.msk.bf16.mxu0 %vm1191_vm4, %v1553_v32 }
  0xa7   :  { %v138_v43 = vpop.permute.xlu1 %137  ;;  %1341 = vmatpush3.bf16.msra.mxu0 %v1504_v17 }
  0xa8   :  { %vm142_vm5 = vcmp.eq.s32.totalorder %v138_v43, %v1665_v29  ;;  %v190_v51 = vpop.permute.xlu0 %189 }
  0xa9   :  { %vm194_vm1 = vcmp.eq.s32.totalorder %v190_v51, %v1665_v29 }
  0xab   :  { %v141_v44 = vpop.permute.xlu1 %140 }
  0xac   :  { %vm143_vm6 = vcmp.eq.s32.totalorder %v141_v44, %v1665_v29 }
  0xad   :  { %vm1193_vm7 = vmpackc.low %vm143_vm6, %vm142_vm5  ;;  %v206_v53 = vpop.permute.xlu0 %205 }
  0xae   :  { %1307 = vmatmul.mubr.msk.bf16.gmra.mrb[12].mxu0 %vm1193_vm7, %v1553_v32  ;;  %vm208_vm4 = vcmp.eq.s32.totalorder %v206_v53, %v1665_v29 }
  0xb0   :  { %v154_v46 = vpop.permute.xlu1 %153 }
  0xb1   :  { %vm156_vm9 = vcmp.eq.s32.totalorder %v154_v46, %v1665_v29 }
  0xb2   :  { %vm1195_vm10 = vmpackc.low %vm156_vm9, %vm155_vm8  ;;  %v229_v57 = vpop.permute.xlu0 %228 }
  0xb3   :  { %1310 = vmatprep.mubr.msk.bf16.mxu0 %vm1195_vm10, %v1553_v32  ;;  %vm233_vm10 = vcmp.eq.s32.totalorder %v229_v57, %v1665_v29 }
  0xb5   :  { %v164_v48 = vpop.permute.xlu1 %163 }
  0xb6   :  { %vm168_vm12 = vcmp.eq.s32.totalorder %v164_v48, %v1665_v29 }
  0xb7   :  { %vm1197_vm13 = vmpackc.low %vm169_vm11, %vm168_vm12  ;;  %v245_v59 = vpop.permute.xlu0 %244 }
  0xb8   :  { %1311 = vmatmul.mubr.msk.bf16.gmra.mrb[16].mxu0 %vm1197_vm13, %v1553_v32  ;;  %vm247_vm13 = vcmp.eq.s32.totalorder %v245_v59, %v1665_v29 }
  0xba   :  { %v177_v49 = vpop.permute.xlu1 %176 }
  0xbb   :  { %vm181_vm14 = vcmp.eq.s32.totalorder %v177_v49, %v1665_v29 }
  0xbe   :  { %v180_v50 = vpop.permute.xlu1 %179 }
  0xbf   :  { %vm182_vm15 = vcmp.eq.s32.totalorder %v180_v50, %v1665_v29 }
  0xc0   :  { %vm1199_vm0 = vmpackc.low %vm182_vm15, %vm181_vm14 }
  0xc1   :  { %1314 = vmatprep.mubr.msk.bf16.mxu0 %vm1199_vm0, %v1553_v32  ;;  %vm1556_vm0 = vmmov 0  }
  0xc2   :  { %1358 = vmatprep.mubr.msk.bf16.mxu1 %vm1556_vm0, %v1554_v61 }
  0xc3   :  { %v193_v52 = vpop.permute.xlu1 %192 }
  0xc4   :  { %vm195_vm2 = vcmp.eq.s32.totalorder %v193_v52, %v1665_v29 }
  0xc5   :  { %vm1201_vm3 = vmpackc.low %vm195_vm2, %vm194_vm1  ;;  %vm484_vm1 = vcmask 261120   ;;  %vm486_vm2 = vcmask 523264  }
  0xc6   :  { %1315 = vmatmul.mubr.msk.bf16.gmra.mrb[20].mxu0 %vm1201_vm3, %v1553_v32  ;;  %vm489_vm3 = vcmask 785408  }
  0xc8   :  { %v203_v54 = vpop.permute.xlu1 %202 }
  0xc9   :  { %vm207_vm5 = vcmp.eq.s32.totalorder %v203_v54, %v1665_v29 }
  0xca   :  { %vm1203_vm6 = vmpackc.low %vm208_vm4, %vm207_vm5  ;;  %vm1123_vm5 = vcmask 130048  }
  0xcb   :  { %1318 = vmatprep.mubr.msk.bf16.mxu0 %vm1203_vm6, %v1553_v32  ;;  %vm1419_vm4 = vmpackc.low %vm484_vm1, %vm484_vm1 }
  0xcd   :  { %v216_v55 = vpop.permute.xlu1 %215 }
  0xce   :  { %vm220_vm7 = vcmp.eq.s32.totalorder %v216_v55, %v1665_v29 }
  0xd1   :  { %v219_v56 = vpop.permute.xlu1 %218 }
  0xd2   :  { %vm221_vm8 = vcmp.eq.s32.totalorder %v219_v56, %v1665_v29 }
  0xd3   :  { %vm1205_vm9 = vmpackc.low %vm221_vm8, %vm220_vm7 }
  0xd4   :  { %1319 = vmatmul.mubr.msk.bf16.gmra.mrb[24].mxu0 %vm1205_vm9, %v1553_v32 }
  0xd6   :  { %v232_v58 = vpop.permute.xlu1 %231 }
  0xd7   :  { %vm234_vm11 = vcmp.eq.s32.totalorder %v232_v58, %v1665_v29 }
  0xd8   :  { %vm1207_vm12 = vmpackc.low %vm234_vm11, %vm233_vm10 }
  0xd9   :  { %1322 = vmatprep.mubr.msk.bf16.mxu0 %vm1207_vm12, %v1553_v32 }
  0xdb   :  { %v242_v60 = vpop.permute.xlu1 %241 }
  0xdc   :  { %vm246_vm14 = vcmp.eq.s32.totalorder %v242_v60, %v1665_v29 }
  0xdd   :  { %vm1209_vm15 = vmpackc.low %vm247_vm13, %vm246_vm14 }
  0xde   :  { %1323 = vmatmul.mubr.msk.bf16.gmra.mrb[28].mxu0 %vm1209_vm15, %v1553_v32 }
  0xdf   :  { %1342 = vmatprep.mubr.msk.bf16.mxu0 %vm1556_vm0, %v1554_v61 }
 0x15d   :  { %v1296_v2 = vpop.f32.mrb[0].mxu0 }
 0x15e   :  { %v335_v4 = vpop.f32.mrb[1].mxu0 }
 0x15f   :  { %v1297_v5 = vpop.f32.mrb[2].mxu0 }
 0x160   :  { %v1740_v6 = vpack.c.bf16 %v1297_v5, %v1296_v2  ;;  %v338_v7 = vpop.f32.mrb[3].mxu0 }
 0x161   :  { %v1745_v9 = vpack.c.bf16 %v338_v7, %v335_v4 }
 0x165   :  { %v1300_v11 = vpop.f32.mrb[4].mxu0 }
 0x166   :  { %v351_v12 = vpop.f32.mrb[5].mxu0 }
 0x167   :  { %v1301_v13 = vpop.f32.mrb[6].mxu0 }
 0x168   :  { %v1754_v14 = vpack.c.bf16 %v1301_v13, %v1300_v11  ;;  %v354_v15 = vpop.f32.mrb[7].mxu0 }
 0x169   :  { %v1756_v16 = vpack.c.bf16 %v354_v15, %v351_v12 }
 0x16a   :  { %537 = vrot.lane.b32.xlu1 %v1754_v14, %s1555_s29 }
 0x173   :  { %v1304_v18 = vpop.f32.mrb[8].mxu0 }
 0x174   :  { %v367_v19 = vpop.f32.mrb[9].mxu0 }
 0x175   :  { %v1305_v20 = vpop.f32.mrb[10].mxu0 }
 0x176   :  { %v1769_v21 = vpack.c.bf16 %v1305_v20, %v1304_v18  ;;  %v370_v22 = vpop.f32.mrb[11].mxu0 }
 0x177   :  { %v1771_v23 = vpack.c.bf16 %v370_v22, %v367_v19 }
 0x178   :  { %542 = vrot.lane.b32.xlu0 %v1769_v21, %s1557_s7 }
 0x179   :  { %539 = vrot.lane.b32.xlu1 %v1771_v23, %s1558_s2 }
 0x17c   :  { %554 = vrot.lane.b32.xlu0 %v1769_v21, %s1558_s2 }
 0x17d   :  { %552 = vrot.lane.b32.xlu1 %v1771_v23, %s1555_s29 }
 0x180   :  { %567 = vrot.lane.b32.xlu0 %v1769_v21, %s1555_s29 }
 0x181   :  { %v1308_v24 = vpop.f32.mrb[12].mxu0 }
 0x182   :  { %v383_v25 = vpop.f32.mrb[13].mxu0 }
 0x183   :  { %v1309_v26 = vpop.f32.mrb[14].mxu0 }
 0x184   :  { %v1783_v27 = vpack.c.bf16 %v1309_v26, %v1308_v24  ;;  %v386_v28 = vpop.f32.mrb[15].mxu0 }
 0x185   :  { %v1785_v29 = vpack.c.bf16 %v386_v28, %v383_v25 }
 0x186   :  { %572 = vrot.lane.b32.xlu0 %v1783_v27, %s1557_s7 }
 0x187   :  { %557 = vrot.lane.b32.xlu1 %v1785_v29, %s1557_s7 }
 0x18a   :  { %479 = vrot.lane.b32.xlu0 %v1745_v9, %s1558_s2 }
 0x18b   :  { %569 = vrot.lane.b32.xlu1 %v1785_v29, %s1558_s2  ;;  %v1312_v30 = vpop.f32.mrb[16].mxu0 }
 0x18c   :  { %v399_v31 = vpop.f32.mrb[17].mxu0 }
 0x18d   :  { %v1313_v32 = vpop.f32.mrb[18].mxu0 }
 0x18e   :  { %584 = vrot.lane.b32.xlu0 %v1783_v27, %s1558_s2  ;;  %v1797_v33 = vpack.c.bf16 %v1313_v32, %v1312_v30  ;;  %v402_v34 = vpop.f32.mrb[19].mxu0 }
 0x18f   :  { %482 = vrot.lane.b32.xlu1 %v1740_v6, %s1557_s7  ;;  %v1801_v35 = vpack.c.bf16 %v402_v34, %v399_v31 }
 0x192   :  { %597 = vrot.lane.b32.xlu0 %v1783_v27, %s1555_s29 }
 0x193   :  { %582 = vrot.lane.b32.xlu1 %v1785_v29, %s1555_s29 }
 0x196   :  { %602 = vrot.lane.b32.xlu0 %v1797_v33, %s1557_s7 }
 0x197   :  { %587 = vrot.lane.b32.xlu1 %v1801_v35, %s1557_s7 }
 0x199   :  { %v1316_v36 = vpop.f32.mrb[20].mxu0 }
 0x19a   :  { %614 = vrot.lane.b32.xlu0 %v1797_v33, %s1558_s2  ;;  %v415_v37 = vpop.f32.mrb[21].mxu0 }
 0x19b   :  { %599 = vrot.lane.b32.xlu1 %v1801_v35, %s1558_s2  ;;  %v1317_v38 = vpop.f32.mrb[22].mxu0 }
 0x19c   :  { %v1815_v39 = vpack.c.bf16 %v1317_v38, %v1316_v36  ;;  %v418_v40 = vpop.f32.mrb[23].mxu0 }
 0x19d   :  { %v1817_v41 = vpack.c.bf16 %v418_v40, %v415_v37 }
 0x19e   :  { %627 = vrot.lane.b32.xlu0 %v1797_v33, %s1555_s29 }
 0x19f   :  { %493 = vrot.lane.b32.xlu1 %v1745_v9, %s1555_s29 }
 0x1a2   :  { %495 = vrot.lane.b32.xlu0 %v1740_v6, %s1558_s2 }
 0x1a3   :  { %612 = vrot.lane.b32.xlu1 %v1801_v35, %s1555_s29 }
 0x1a6   :  { %632 = vrot.lane.b32.xlu0 %v1815_v39, %s1557_s7 }
 0x1a7   :  { %617 = vrot.lane.b32.xlu1 %v1817_v41, %s1557_s7  ;;  %v1320_v42 = vpop.f32.mrb[24].mxu0 }
 0x1a8   :  { %v431_v43 = vpop.f32.mrb[25].mxu0 }
 0x1a9   :  { %v1321_v44 = vpop.f32.mrb[26].mxu0 }
 0x1aa   :  { %644 = vrot.lane.b32.xlu0 %v1815_v39, %s1558_s2  ;;  %v1833_v45 = vpack.c.bf16 %v1321_v44, %v1320_v42  ;;  %v434_v46 = vpop.f32.mrb[27].mxu0 }
 0x1ab   :  { %629 = vrot.lane.b32.xlu1 %v1817_v41, %s1558_s2  ;;  %v1837_v47 = vpack.c.bf16 %v434_v46, %v431_v43 }
 0x1ae   :  { %657 = vrot.lane.b32.xlu0 %v1815_v39, %s1555_s29 }
 0x1af   :  { %498 = vrot.lane.b32.xlu1 %v1756_v16, %s1557_s7 }
 0x1b1   :  { %v1324_v48 = vpop.f32.mrb[28].mxu0 }
 0x1b2   :  { %662 = vrot.lane.b32.xlu0 %v1833_v45, %s1557_s7  ;;  %v447_v49 = vpop.f32.mrb[29].mxu0 }
 0x1b3   :  { %642 = vrot.lane.b32.xlu1 %v1817_v41, %s1555_s29  ;;  %v1325_v50 = vpop.f32.mrb[30].mxu0 }
 0x1b4   :  { %v477_v51 = vpack.c.bf16 %v1325_v50, %v1324_v48  ;;  %v450_v52 = vpop.f32.mrb[31].mxu0 }
 0x1b5   :  { %v1847_v53 = vpack.c.bf16 %v450_v52, %v447_v49 }
 0x1b6   :  { %509 = vrot.lane.b32.xlu0 %v1756_v16, %s1558_s2 }
 0x1b7   :  { %647 = vrot.lane.b32.xlu1 %v1837_v47, %s1557_s7 }
 0x1ba   :  { %672 = vrot.lane.b32.xlu0 %v1837_v47, %s1555_s29 }
 0x1bb   :  { %659 = vrot.lane.b32.xlu1 %v1837_v47, %s1558_s2 }
 0x1be   :  { %677 = vrot.lane.b32.xlu0 %v1847_v53, %s1557_s7 }
 0x1bf   :  { %674 = vrot.lane.b32.xlu1 %v1833_v45, %s1558_s2 }
 0x1c2   :  { %687 = vrot.lane.b32.xlu0 %v1833_v45, %s1555_s29 }
 0x1c3   :  { %507 = vrot.lane.b32.xlu1 %v1740_v6, %s1555_s29 }
 0x1c6   :  { %692 = vrot.lane.b32.xlu0 %v477_v51, %s1557_s7 }
 0x1c7   :  { %512 = vrot.lane.b32.xlu1 %v1754_v14, %s1557_s7 }
 0x1ca   :  { %524 = vrot.lane.b32.xlu0 %v1754_v14, %s1558_s2 }
 0x1cb   :  { %689 = vrot.lane.b32.xlu1 %v1847_v53, %s1558_s2 }
 0x1ce   :  { %702 = vrot.lane.b32.xlu0 %v1847_v53, %s1555_s29 }
 0x1cf   :  { %522 = vrot.lane.b32.xlu1 %v1756_v16, %s1555_s29 }
 0x1d2   :  { %713 = vrot.lane.b32.xlu0 %v477_v51, %s1555_s29 }
 0x1d3   :  { %527 = vrot.lane.b32.xlu1 %v1771_v23, %s1557_s7 }
 0x1d7   :  { %704 = vrot.lane.b32.xlu1 %v477_v51, %s1558_s2 }
 0x1dc   :  { %v538_v54 = vpop.permute.xlu1 %537 }
 0x1dd   :  { %v546_v56 = vsel %vm484_vm1, %v1756_v16, %v538_v54 }
 0x1ea   :  { %v543_v55 = vpop.permute.xlu0 %542 }
 0x1eb   :  { %v540_v57 = vpop.permute.xlu1 %539 }
 0x1ec   :  { %v548_v58 = vsel %vm486_vm2, %v546_v56, %v540_v57 }
 0x1ed   :  { %v550_v59 = vsel %vm489_vm3, %v548_v58, %v543_v55 }
 0x1ee   :  { %1359 = vmatmul.mubr.bf16.vlgmr.msra.gmra.mrb[0].mxu1 %v550_v59  ;;  %v555_v60 = vpop.permute.xlu0 %554 }
 0x1ef   :  { %1362 = vmatprep.mubr.msk.bf16.mxu1 %vm1556_vm0, %v1554_v61  ;;  %v553_v62 = vpop.permute.xlu1 %552 }
 0x1f0   :  { %v561_v0 = vsel %vm484_vm1, %v1754_v14, %v553_v62 }
 0x1f1   :  { %v563_v3 = vsel %vm486_vm2, %v561_v0, %v555_v60 }
 0x1f2   :  { %v568_v63 = vpop.permute.xlu0 %567 }
 0x1f3   :  { %v576_v8 = vsel %vm484_vm1, %v1771_v23, %v568_v63 }
 0x1f8   :  { %v573_v1 = vpop.permute.xlu0 %572 }
 0x1f9   :  { %v558_v2 = vpop.permute.xlu1 %557 }
 0x1fa   :  { %v565_v4 = vsel %vm489_vm3, %v563_v3, %v558_v2 }
 0x1fb   :  { %1363 = vmatmul.mubr.bf16.gmra.mrb[4].mxu1 %v565_v4 }
 0x1fc   :  { %v480_v5 = vpop.permute.xlu0 %479  ;;  %1366 = vmatprep.mubr.msk.bf16.mxu1 %vm1556_vm0, %v1554_v61 }
 0x1fd   :  { %v570_v7 = vpop.permute.xlu1 %569  ;;  %v488_v12 = vsel %vm486_vm2, 0, %v480_v5 }
 0x1fe   :  { %v578_v10 = vsel %vm486_vm2, %v576_v8, %v570_v7 }
 0x1ff   :  { %v580_v15 = vsel %vm489_vm3, %v578_v10, %v573_v1 }
 0x200   :  { %v585_v11 = vpop.permute.xlu0 %584 }
 0x201   :  { %v483_v13 = vpop.permute.xlu1 %482 }
 0x202   :  { %v491_v14 = vsel %vm489_vm3, %v488_v12, %v483_v13 }
 0x203   :  { %1343 = vmatmul.mubr.bf16.vlgmr.msra.gmra.mrb[32].mxu0 %v491_v14  ;;  %1367 = vmatmul.mubr.bf16.gmra.mrb[8].mxu1 %v580_v15 }
 0x204   :  { %v598_v16 = vpop.permute.xlu0 %597  ;;  %1370 = vmatprep.mubr.msk.bf16.mxu1 %vm1556_vm0, %v1554_v61  ;;  %1346 = vmatprep.mubr.msk.bf16.mxu0 %vm1556_vm0, %v1554_v61 }
 0x205   :  { %v583_v17 = vpop.permute.xlu1 %582  ;;  %v606_v26 = vsel %vm484_vm1, %v1785_v29, %v598_v16 }
 0x206   :  { %v591_v18 = vsel %vm484_vm1, %v1769_v21, %v583_v17 }
 0x207   :  { %v593_v22 = vsel %vm486_vm2, %v591_v18, %v585_v11 }
 0x208   :  { %v603_v19 = vpop.permute.xlu0 %602 }
 0x209   :  { %v588_v20 = vpop.permute.xlu1 %587 }
 0x20a   :  { %v595_v23 = vsel %vm489_vm3, %v593_v22, %v588_v20 }
 0x20b   :  { %1371 = vmatmul.mubr.bf16.gmra.mrb[12].mxu1 %v595_v23 }
 0x20c   :  { %v615_v24 = vpop.permute.xlu0 %614  ;;  %1374 = vmatprep.mubr.msk.bf16.mxu1 %vm1556_vm0, %v1554_v61 }
 0x20d   :  { %v600_v25 = vpop.permute.xlu1 %599 }
 0x20e   :  { %v608_v28 = vsel %vm486_vm2, %v606_v26, %v600_v25 }
 0x20f   :  { %v610_v21 = vsel %vm489_vm3, %v608_v28, %v603_v19 }
 0x210   :  { %v628_v30 = vpop.permute.xlu0 %627 }
 0x211   :  { %v494_v31 = vpop.permute.xlu1 %493  ;;  %v636_v44 = vsel %vm484_vm1, %v1801_v35, %v628_v30  ;;  %v1559_v30 = vmov 0.0|0.0  }
 0x212   :  { %v501_v48 = vsel %vm484_vm1, 0, %v494_v31  ;;  %1417 = vmatprep.subr.bf16.mxu0 %v1559_v30 }
 0x213   :  { %1375 = vmatmul.mubr.bf16.gmra.mrb[16].mxu1 %v610_v21 }
 0x214   :  { %v496_v32 = vpop.permute.xlu0 %495  ;;  %1378 = vmatprep.mubr.msk.bf16.mxu1 %vm1556_vm0, %v1554_v61 }
 0x215   :  { %v613_v34 = vpop.permute.xlu1 %612  ;;  %v503_v49 = vsel %vm486_vm2, %v501_v48, %v496_v32 }
 0x216   :  { %v621_v36 = vsel %vm484_vm1, %v1783_v27, %v613_v34  ;;  %v1032_v34 = vld [vmem:[%s2070_s5] sm:$0xff] }
 0x217   :  { %v623_v40 = vsel %vm486_vm2, %v621_v36, %v615_v24  ;;  %1035 = vperm.xlu1 %1487, %v1032_v34  }
 0x218   :  { %v633_v37 = vpop.permute.xlu0 %632 }
 0x219   :  { %v618_v38 = vpop.permute.xlu1 %617 }
 0x21a   :  { %v625_v29 = vsel %vm489_vm3, %v623_v40, %v618_v38 }
 0x21b   :  { %1379 = vmatmul.mubr.bf16.gmra.mrb[20].mxu1 %v625_v29 }
 0x21c   :  { %v645_v42 = vpop.permute.xlu0 %644  ;;  %1382 = vmatprep.mubr.msk.bf16.mxu1 %vm1556_vm0, %v1554_v61 }
 0x21d   :  { %v630_v43 = vpop.permute.xlu1 %629 }
 0x21e   :  { %v638_v46 = vsel %vm486_vm2, %v636_v44, %v630_v43 }
 0x21f   :  { %v640_v52 = vsel %vm489_vm3, %v638_v46, %v633_v37 }
 0x220   :  { %v658_v27 = vpop.permute.xlu0 %657 }
 0x221   :  { %v499_v50 = vpop.permute.xlu1 %498  ;;  %v666_v63 = vsel %vm484_vm1, %v1817_v41, %v658_v27 }
 0x222   :  { %v505_v51 = vsel %vm489_vm3, %v503_v49, %v499_v50 }
 0x223   :  { %1347 = vmatmul.mubr.bf16.gmra.mrb[36].mxu0 %v505_v51  ;;  %1383 = vmatmul.mubr.bf16.gmra.mrb[24].mxu1 %v640_v52 }
 0x224   :  { %v663_v54 = vpop.permute.xlu0 %662  ;;  %1386 = vmatprep.mubr.msk.bf16.mxu1 %vm1556_vm0, %v1554_v61  ;;  %1350 = vmatprep.mubr.msk.bf16.mxu0 %vm1556_vm0, %v1554_v61 }
 0x225   :  { %v643_v35 = vpop.permute.xlu1 %642 }
 0x226   :  { %v651_v55 = vsel %vm484_vm1, %v1797_v33, %v643_v35 }
 0x227   :  { %v653_v58 = vsel %vm486_vm2, %v651_v55, %v645_v42 }
 0x228   :  { %v510_v56 = vpop.permute.xlu0 %509 }
 0x229   :  { %v648_v57 = vpop.permute.xlu1 %647 }
 0x22a   :  { %v655_v59 = vsel %vm489_vm3, %v653_v58, %v648_v57 }
 0x22b   :  { %1387 = vmatmul.mubr.bf16.gmra.mrb[28].mxu1 %v655_v59 }
 0x22c   :  { %v673_v60 = vpop.permute.xlu0 %672  ;;  %1390 = vmatprep.mubr.msk.bf16.mxu1 %vm1556_vm0, %v1554_v61 }
 0x22d   :  { %v660_v62 = vpop.permute.xlu1 %659  ;;  %v681_v5 = vsel %vm484_vm1, %v1815_v39, %v673_v60 }
 0x22e   :  { %v668_v0 = vsel %vm486_vm2, %v666_v63, %v660_v62 }
 0x22f   :  { %v670_v33 = vsel %vm489_vm3, %v668_v0, %v663_v54 }
 0x230   :  { %v678_v1 = vpop.permute.xlu0 %677 }
 0x231   :  { %v675_v2 = vpop.permute.xlu1 %674 }
 0x232   :  { %v683_v41 = vsel %vm486_vm2, %v681_v5, %v675_v2 }
 0x233   :  { %1391 = vmatmul.mubr.bf16.gmra.mrb[32].mxu1 %v670_v33  ;;  %v685_v13 = vsel %vm489_vm3, %v683_v41, %v678_v1 }
 0x234   :  { %v688_v3 = vpop.permute.xlu0 %687  ;;  %1394 = vmatprep.mubr.msk.bf16.mxu1 %vm1556_vm0, %v1554_v61 }
 0x235   :  { %v508_v4 = vpop.permute.xlu1 %507 }
 0x236   :  { %v516_v7 = vsel %vm484_vm1, %v1745_v9, %v508_v4  ;;  %v696_v9 = vsel %vm484_vm1, %v1837_v47, %v688_v3 }
 0x237   :  { %v518_v10 = vsel %vm486_vm2, %v516_v7, %v510_v56 }
 0x238   :  { %v693_v11 = vpop.permute.xlu0 %692 }
 0x239   :  { %v513_v8 = vpop.permute.xlu1 %512 }
 0x23a   :  { %v520_v12 = vsel %vm489_vm3, %v518_v10, %v513_v8 }
 0x23b   :  { %1351 = vmatmul.mubr.bf16.gmra.mrb[40].mxu0 %v520_v12  ;;  %1395 = vmatmul.mubr.bf16.gmra.mrb[36].mxu1 %v685_v13 }
 0x23c   :  { %1398 = vmatprep.mubr.msk.bf16.mxu1 %vm1556_vm0, %v1554_v61  ;;  %1354 = vmatprep.mubr.msk.bf16.mxu0 %vm1556_vm0, %v1554_v61  ;;  %v525_v15 = vpop.permute.xlu0 %524 }
 0x23d   :  { %v690_v39 = vpop.permute.xlu1 %689 }
 0x23e   :  { %v698_v14 = vsel %vm486_vm2, %v696_v9, %v690_v39 }
 0x23f   :  { %v700_v18 = vsel %vm489_vm3, %v698_v14, %v693_v11 }
 0x240   :  { %v703_v22 = vpop.permute.xlu0 %702 }
 0x241   :  { %v523_v16 = vpop.permute.xlu1 %522  ;;  %v708_v47 = vsel %vm484_vm1, %v1833_v45, %v703_v22 }
 0x242   :  { %v531_v17 = vsel %vm484_vm1, %v1740_v6, %v523_v16 }
 0x243   :  { %1399 = vmatmul.mubr.bf16.gmra.mrb[40].mxu1 %v700_v18  ;;  %v533_v20 = vsel %vm486_vm2, %v531_v17, %v525_v15 }
 0x244   :  { %1402 = vmatprep.mubr.msk.bf16.mxu1 %vm1556_vm0, %v1554_v61  ;;  %v714_v25 = vpop.permute.xlu0 %713 }
 0x245   :  { %v528_v19 = vpop.permute.xlu1 %527  ;;  %v717_v26 = vsel %vm484_vm1, %v1847_v53, %v714_v25 }
 0x246   :  { %v535_v23 = vsel %vm489_vm3, %v533_v20, %v528_v19  ;;  %v718_v28 = vsel %vm486_vm2, %v717_v26, 0 }
 0x247   :  { %1355 = vmatmul.mubr.bf16.gmra.mrb[44].mxu0 %v535_v23 }
 0x248   :  { %1414 = vmatprep.mubr.msk.f32.mxu0 %vm1556_vm0, %v1554_v61 }
 0x249   :  { %v705_v6 = vpop.permute.xlu1 %704 }
 0x24a   :  { %v710_v24 = vsel %vm486_vm2, %v708_v47, %v705_v6 }
 0x24b   :  { %1403 = vmatmul.mubr.msk.bf16.gmra.mrb[44].mxu1 %vm489_vm3, %v710_v24 }
 0x24c   :  { %1406 = vmatprep.mubr.msk.bf16.mxu1 %vm1556_vm0, %v1554_v61 }
 0x253   :  { %1407 = vmatmul.mubr.msk.bf16.gmra.mrb[48].mxu1 %vm489_vm3, %v718_v28 }
 0x2c1   :  { %v851_v31 = vpop.f32.mrb[0].mxu1 }
 0x2c2   :  { %v1360_v45 = vpop.f32.mrb[1].mxu1  ;;  %v960_v20 = vsel %vm484_vm1, %v851_v31, -inf }
 0x2c3   :  { %v854_v21 = vpop.f32.mrb[2].mxu1 }
 0x2c4   :  { %v1361_v32 = vpop.f32.mrb[3].mxu1  ;;  %v993_v26 = vsel %vm484_vm1, %v854_v21, -inf }
 0x2ce   :  { %v1980_v36 = vpop.f32.mrb[4].mxu1 }
 0x2cf   :  { %v1364_v61 = vpop.f32.mrb[5].mxu1 }
 0x2d0   :  { %v1982_v37 = vpop.f32.mrb[6].mxu1 }
 0x2d1   :  { %v1365_v53 = vpop.f32.mrb[7].mxu1 }
 0x2d6   :  { %v819_v38 = vpop.f32.mrb[32].mxu0  ;;  %v867_v40 = vpop.f32.mrb[8].mxu1 }
 0x2d7   :  { %v1344_v29 = vpop.f32.mrb[33].mxu0  ;;  %v1368_v42 = vpop.f32.mrb[9].mxu1  ;;  %v954_v9 = vsel %vm484_vm1, %v819_v38, -inf  ;;  %v964_v28 = vsel %vm484_vm1, %v867_v40, -inf }
 0x2d8   :  { %v822_v43 = vpop.f32.mrb[34].mxu0  ;;  %v870_v44 = vpop.f32.mrb[10].mxu1 }
 0x2d9   :  { %v1345_v46 = vpop.f32.mrb[35].mxu0  ;;  %v1369_v48 = vpop.f32.mrb[11].mxu1  ;;  %v987_v22 = vsel %vm484_vm1, %v822_v43, -inf  ;;  %v997_v32 = vsel %vm484_vm1, %v870_v44, -inf }
 0x2de   :  { %v1984_v27 = vpop.f32.mrb[12].mxu1 }
 0x2df   :  { %v1372_v49 = vpop.f32.mrb[13].mxu1 }
 0x2e0   :  { %v1986_v50 = vpop.f32.mrb[14].mxu1 }
 0x2e1   :  { %v1373_v51 = vpop.f32.mrb[15].mxu1 }
 0x2e6   :  { %v883_v52 = vpop.f32.mrb[16].mxu1 }
 0x2e7   :  { %v1376_v54 = vpop.f32.mrb[17].mxu1  ;;  %v968_v34 = vsel %vm484_vm1, %v883_v52, -inf }
 0x2e8   :  { %v886_v35 = vpop.f32.mrb[18].mxu1 }
 0x2e9   :  { %v1377_v55 = vpop.f32.mrb[19].mxu1  ;;  %v1001_v38 = vsel %vm484_vm1, %v886_v35, -inf }
 0x2ee   :  { %v1988_v56 = vpop.f32.mrb[20].mxu1 }
 0x2ef   :  { %v1380_v57 = vpop.f32.mrb[21].mxu1 }
 0x2f0   :  { %v1990_v58 = vpop.f32.mrb[22].mxu1 }
 0x2f1   :  { %v1381_v59 = vpop.f32.mrb[23].mxu1 }
 0x2f6   :  { %v827_v60 = vpop.f32.mrb[36].mxu0  ;;  %v899_v62 = vpop.f32.mrb[24].mxu1 }
 0x2f7   :  { %v1348_v63 = vpop.f32.mrb[37].mxu0  ;;  %v1384_v0 = vpop.f32.mrb[25].mxu1  ;;  %v972_v29 = vsel %vm484_vm1, %v899_v62, -inf  ;;  %v955_v52 = vsel %vm484_vm1, %v827_v60, -inf }
 0x2f8   :  { %v830_v1 = vpop.f32.mrb[38].mxu0  ;;  %v902_v2 = vpop.f32.mrb[26].mxu1 }
 0x2f9   :  { %v1349_v33 = vpop.f32.mrb[39].mxu0  ;;  %v1385_v3 = vpop.f32.mrb[27].mxu1  ;;  %v1005_v21 = vsel %vm484_vm1, %v902_v2, -inf  ;;  %v962_v2 = vsel %vm484_vm1, %v1980_v36, -inf }
 0x2fa   :  { %v988_v3 = vsel %vm484_vm1, %v830_v1, -inf  ;;  %v999_v1 = vsel %vm484_vm1, %v1986_v50, -inf }
 0x2fe   :  { %v1992_v4 = vpop.f32.mrb[28].mxu1 }
 0x2ff   :  { %v1388_v5 = vpop.f32.mrb[29].mxu1 }
 0x300   :  { %v1994_v7 = vpop.f32.mrb[30].mxu1 }
 0x301   :  { %v1389_v41 = vpop.f32.mrb[31].mxu1 }
 0x306   :  { %v915_v8 = vpop.f32.mrb[32].mxu1 }
 0x307   :  { %v1392_v10 = vpop.f32.mrb[33].mxu1  ;;  %v976_v40 = vsel %vm484_vm1, %v915_v8, -inf }
 0x308   :  { %v918_v11 = vpop.f32.mrb[34].mxu1 }
 0x309   :  { %v1393_v12 = vpop.f32.mrb[35].mxu1  ;;  %v1009_v55 = vsel %vm484_vm1, %v918_v11, -inf }
 0x30e   :  { %v835_v13 = vpop.f32.mrb[40].mxu0  ;;  %v1996_v39 = vpop.f32.mrb[36].mxu1 }
 0x30f   :  { %v956_v14 = vsel %vm484_vm1, %v835_v13, -inf  ;;  %v1352_v15 = vpop.f32.mrb[41].mxu0  ;;  %v1396_v16 = vpop.f32.mrb[37].mxu1  ;;  %v995_v13 = vsel %vm484_vm1, %v1982_v37, -inf  ;;  %v974_v37 = vsel %vm484_vm1, %v1992_v4, -inf  ;;  %v978_v50 = vsel %vm484_vm1, %v1996_v39, -inf }
 0x310   :  { %v957_v17 = vmax.f32 %v954_v9, %v956_v14  ;;  %v838_v18 = vpop.f32.mrb[42].mxu0  ;;  %v2000_v19 = vpop.f32.mrb[38].mxu1  ;;  %v966_v9 = vsel %vm484_vm1, %v1984_v27, -inf  ;;  %v1221_v39 = vld [vmem:[%s2068_s3] ss:$0 sm:$0xff] }
 0x311   :  { %v989_v23 = vsel %vm484_vm1, %v838_v18, -inf  ;;  %v1353_v47 = vpop.f32.mrb[43].mxu0  ;;  %v1397_v6 = vpop.f32.mrb[39].mxu1 }
 0x312   :  { %v961_v24 = vmax.f32 %v957_v17, %v960_v20  ;;  %v990_v25 = vmax.f32 %v987_v22, %v989_v23  ;;  %v970_v17 = vsel %vm484_vm1, %v1988_v56, -inf  ;;  %v1003_v23 = vsel %vm484_vm1, %v1990_v58, -inf }
 0x313   :  { %v1007_v6 = vsel %vm484_vm1, %v1994_v7, -inf }
 0x314   :  { %v965_v30 = vmax.f32 %v961_v24, %v964_v28  ;;  %v994_v45 = vmax.f32 %v990_v25, %v993_v26  ;;  %v1011_v26 = vsel %vm484_vm1, %v2000_v19, -inf }
 0x316   :  { %v998_v61 = vmax.f32 %v994_v45, %v997_v32  ;;  %v931_v31 = vpop.f32.mrb[40].mxu1  ;;  %v969_v53 = vmax.f32 %v965_v30, %v968_v34 }
 0x317   :  { %v1400_v42 = vpop.f32.mrb[41].mxu1  ;;  %v980_v35 = vsel %vm484_vm1, %v931_v31, -inf }
 0x318   :  { %v973_v43 = vmax.f32 %v969_v53, %v972_v29  ;;  %v934_v46 = vpop.f32.mrb[42].mxu1  ;;  %v1002_v48 = vmax.f32 %v998_v61, %v1001_v38 }
 0x319   :  { %v1401_v49 = vpop.f32.mrb[43].mxu1  ;;  %v1013_v5 = vsel %vm484_vm1, %v934_v46, -inf }
 0x31a   :  { %v977_v51 = vmax.f32 %v973_v43, %v976_v40  ;;  %v1006_v44 = vmax.f32 %v1002_v48, %v1005_v21  ;;  %v843_v54 = vpop.f32.mrb[44].mxu0  ;;  %v1031_v40 = vld [vmem:[%s2069_s4] sm:$0xff]  ;;  %v1036_v49 = vpop.permute.xlu1 %1035 }
 0x31b   :  { %v958_v57 = vsel %vm484_vm1, %v843_v54, -inf  ;;  %v1356_v59 = vpop.f32.mrb[45].mxu0 }
 0x31c   :  { %v981_v62 = vmax.f32 %v977_v51, %v980_v35  ;;  %v1010_v63 = vmax.f32 %v1006_v44, %v1009_v55  ;;  %v959_v0 = vmax.f32 %v955_v52, %v958_v57  ;;  %v846_v33 = vpop.f32.mrb[46].mxu0 }
 0x31d   :  { %v991_v60 = vsel %vm484_vm1, %v846_v33, -inf  ;;  %v1357_v41 = vpop.f32.mrb[47].mxu0 }
 0x31e   :  { %v1014_v8 = vmax.f32 %v1010_v63, %v1013_v5  ;;  %v963_v10 = vmax.f32 %v959_v0, %v962_v2  ;;  %v992_v11 = vmax.f32 %v988_v3, %v991_v60  ;;  %v939_v12 = vpop.f32.mrb[44].mxu1 }
 0x31f   :  { %v1404_v14 = vpop.f32.mrb[45].mxu1  ;;  %v982_v28 = vsel %vm484_vm1, %v939_v12, -inf }
 0x320   :  { %v967_v15 = vmax.f32 %v963_v10, %v966_v9  ;;  %v996_v36 = vmax.f32 %v992_v11, %v995_v13  ;;  %v942_v16 = vpop.f32.mrb[46].mxu1 }
 0x321   :  { %v1405_v18 = vpop.f32.mrb[47].mxu1  ;;  %v1015_v7 = vsel %vm484_vm1, %v942_v16, -inf }
 0x322   :  { %v1000_v20 = vmax.f32 %v996_v36, %v999_v1  ;;  %v971_v22 = vmax.f32 %v967_v15, %v970_v17 }
 0x324   :  { %v975_v27 = vmax.f32 %v971_v22, %v974_v37  ;;  %v1004_v47 = vmax.f32 %v1000_v20, %v1003_v23 }
 0x326   :  { %v979_v24 = vmax.f32 %v975_v27, %v978_v50  ;;  %v1008_v25 = vmax.f32 %v1004_v47, %v1007_v6  ;;  %v947_v56 = vpop.f32.mrb[48].mxu1 }
 0x327   :  { %v984_v58 = vsel %vm484_vm1, %v947_v56, -inf  ;;  %v1408_v30 = vpop.f32.mrb[49].mxu1 }
 0x328   :  { %v983_v4 = vmax.f32 %v979_v24, %v982_v28  ;;  %v1012_v45 = vmax.f32 %v1008_v25, %v1011_v26  ;;  %v985_v32 = vmax.f32 %v981_v62, %v984_v58  ;;  %v950_v34 = vpop.f32.mrb[50].mxu1 }
 0x329   :  { %v1017_v61 = vsel %vm484_vm1, %v950_v34, -inf  ;;  %v1409_v31 = vpop.f32.mrb[51].mxu1 }
 0x32a   :  { %v1016_v53 = vmax.f32 %v1012_v45, %v1015_v7  ;;  %v986_v19 = vmax.f32 %v985_v32, %v983_v4  ;;  %v1018_v38 = vmax.f32 %v1014_v8, %v1017_v61 }
 0x32c   :  { %v1027_v29 = vadd.f32 %v1221_v39, %v986_v19  ;;  %v1019_v42 = vmax.f32 %v1018_v38, %v1016_v53 }
 0x32e   :  { %v1028_v43 = vadd.f32 %v1221_v39, %v1019_v42  ;;  %1505 = vtanh.f32 %v1027_v29 }
 0x330   :  { %1507 = vtanh.f32 %v1028_v43 }
 0x338   :  { %v1506_v46 = vpop.eup %1505 }
 0x33a   :  { %v1508_v48 = vpop.eup %1507 }
 0x33b   :  { %v1418_v21 = vpack.c.bf16 %v1508_v48, %v1506_v46 }
 0x33d   :  { %1420 = vmatpush3.bf16.xpose.msk.msra.mxu0 %vm1419_vm4, %v1418_v21 }
 0x344   :  { %1415 = vmatmul.mubr.msk.f32.vlgmr.msra.gmra.mrb[48].mxu0 %vm484_vm1, %v1031_v40 }
 0x417   :  { %v1113_v51 = vpop.f32.mrb[48].mxu0 }
 0x418   :  { %v1114_v44 = vadd.f32 %v1113_v51, %v1036_v49  ;;  %v1416_v54 = vpop.f32.mrb[49].mxu0 }
 0x41a   :  { %v1225_v52 = vmul.f32 -1.442695, %v1114_v44 }
 0x41c   :  { %1509 = vpow2.f32 %v1225_v52 }
 0x426   :  { %v1510_v55 = vpop.eup %1509 }
 0x427   :  { %v1120_v35 = vadd.f32 1.0, %v1510_v55 }
 0x429   :  { %1511 = vrcp.f32 %v1120_v35 }
 0x433   :  { %v1512_v57 = vpop.eup %1511 }
 0x434   :  { %1124 = vst.msk [vmem:[#allocation2] sm:$0xff] %vm1123_vm5, %v1512_v57 }
 0x435   :  { %1524 = shalt.err (!%p1521_p4)
}
 0x436   :  { %s1525_s1 = scalar_lea.hbm %s2071_s6, 128 }
 0x437   :  { %p1526_p5 = scmp.ne.s32.totalorder %s2071_s6, %s1525_s1  ;;  %p1529_p6 = scmp.lt.u32.totalorder %s1525_s1, %s2071_s6 }
 0x439   :  { %p1531_p7 = pnand %p1529_p6, %p1526_p5 }
 0x43b   :  { %1534 = shalt.err (!%p1531_p7)
}
 0x43c   :  { %1134 = dma.vmem_to_hbm [thread:$0]  %s1132_s13, 128, %s2071_s6, [#allocation3]  }
 0x43d   :  { %1535 = dma.done.wait [#allocation3], 128  }
 0x43e   :  { %1536 = vsyncadd [#allocation3], 4294967168 }
 0x43f   :  { %1138 = vsyncpa [#allocation3], 1 }

</bundles_post_ra>
